<compile_context>
chip_gen: v6e
topology: v6e:2x2x1
jax: 0.10.0
libtpu: 0.0.40
codegen_flags: <defaults>
</compile_context>

<pallas_src>
import jax
import jax.numpy as jnp
from jax import lax
from jax.experimental import pallas as pl
from jax.experimental.pallas import tpu as pltpu

BN_EPS = 1e-3   # nn.BatchNorm1d(eps=0.001)
KSIZE = 9       # nn.Conv1d(kernel_size=9)
PAD = 4         # padding of the padded convs in branch1

_MAX_B_TILE = 8                       # batch rows per grid step (upper bound)
_X_BLOCK_BYTE_TARGET = 2 << 20        # keep a single x block around ~2 MiB
_Y_CACHE_BUDGET = 16 << 20            # whole-batch y cache budget (v7x-safe)
_VMEM_LIMIT_CAP = 64 << 20            # <= physical VMEM on every TPU gen


def _largest_divisor_leq(n, cap):
    cap = max(1, min(n, cap))
    for d in range(cap, 0, -1):
        if n % d == 0:
            return d
    return 1


def _padded_bytes(shape, itemsize=4):
    """Bytes of a block after padding its last two dims to (8, 128) tiles."""
    lead = 1
    for d in shape[:-2]:
        lead *= d
    sub = -(-shape[-2] // 8) * 8
    lane = -(-shape[-1] // 128) * 128
    return lead * sub * lane * itemsize


def _make_conv_bn_kernel(*, ksize, c_out, l_out, out_pad, b_tile, inv_m,
                         relu, has_residual, use_cache):
    """Fused Conv1d(k, stride=1) + BatchNorm1d(batch stats) [+res] [+ReLU]."""

    def conv_tile(x_ref, w_ref):
        # x_ref: (b_tile, c_in, l_in) VMEM (conv padding baked in as zero cols)
        # w_ref: (c_out, ksize*c_in) with w[o, k*c_in + i] = weight[o, i, k]
        w = w_ref[...]
        rows = []
        for b in range(b_tile):
            # In-VMEM im2col: K shifted sublane copies -> (ksize*c_in, l_out),
            # then ONE MXU matmul with contraction depth ksize*c_in.
            slab = jnp.concatenate(
                [x_ref[b, :, k:k + l_out] for k in range(ksize)], axis=0)
            rows.append(jnp.dot(w, slab, preferred_element_type=jnp.float32))
        return jnp.stack(rows, axis=0)          # (b_tile, c_out, l_out) f32

    def kernel(*refs):
        it = iter(refs)
        x_ref = next(it)
        w_ref = next(it)
        gb_ref = next(it)
        r_ref = next(it) if has_residual else None
        out_ref = next(it)
        y_cache = next(it) if use_cache else None
        stats_ref = next(it)                    # (c_out, 2): [sum, sumsq]

        phase = pl.program_id(0)
        n = pl.program_id(1)

        @pl.when(jnp.logical_and(phase == 0, n == 0))
        def _init_stats():
            stats_ref[...] = jnp.zeros_like(stats_ref)

        @pl.when(phase == 0)
        def _accumulate():
            y = conv_tile(x_ref, w_ref)
            s = jnp.sum(jnp.sum(y, axis=2, keepdims=True), axis=0)      # (c_out,1)
            q = jnp.sum(jnp.sum(y * y, axis=2, keepdims=True), axis=0)  # (c_out,1)
            stats_ref[...] += jnp.concatenate([s, q], axis=1)
            if use_cache:
                y_cache[n] = y                  # keep conv result resident

        @pl.when(phase == 1)
        def _normalize_and_store():
            if use_cache:
                y = y_cache[n]                  # no x re-read, no recompute
            else:
                y = conv_tile(x_ref, w_ref)     # fallback: recompute
            stats = stats_ref[...]
            mean = stats[:, 0:1] * inv_m                        # (c_out, 1)
            var = stats[:, 1:2] * inv_m - mean * mean           # biased (train BN)
            scale = gb_ref[:, 0:1] * lax.rsqrt(var + BN_EPS)
            shift = gb_ref[:, 1:2] - mean * scale
            out = y * scale[None, :, :] + shift[None, :, :]     # (b, c_out, l_out)
            if has_residual:
                out = out + r_ref[...]
            if relu:
                out = jnp.maximum(out, 0.0)
            out = out.astype(out_ref.dtype)
            if out_pad > 0:
                # Build the pre-padded row in registers; single full-block store.
                z = jnp.zeros((b_tile, c_out, out_pad), out_ref.dtype)
                out = jnp.concatenate([z, out, z], axis=2)
            out_ref[...] = out

    return kernel


def conv1d_bn_act(x, weight, gamma, beta, *, relu=False, out_pad=0, residual=None):
    """x: (N, C_in, L_in) NCL f32 (conv padding already present as zero columns).
    weight: (C_out, C_in, K); gamma/beta: (C_out,).
    Returns (N, C_out, L_out + 2*out_pad) f32 NCL, zero edges if out_pad>0."""
    n_batch, c_in, l_in = x.shape
    c_out, c_in_w, ksize = weight.shape
    assert c_in_w == c_in and ksize == KSIZE
    l_out = l_in - ksize + 1          # stride = 1
    assert l_out >= 1
    l_store = l_out + 2 * out_pad

    # Batch tile: largest divisor of N <= min(_MAX_B_TILE, x-block byte target).
    bt_cap = max(1, _X_BLOCK_BYTE_TARGET // max(1, c_in * l_in * 4))
    b_tile = _largest_divisor_leq(n_batch, min(_MAX_B_TILE, bt_cap))
    n_tiles = n_batch // b_tile

    # (C_out, C_in, K) -> (C_out, K*C_in) matching the in-kernel im2col order
    # slab[k*c_in + i, l] = x[i, k + l].
    w_mat = jnp.transpose(weight, (0, 2, 1)).reshape(c_out, ksize * c_in)
    w_mat = w_mat.astype(jnp.float32)
    gb = jnp.stack([gamma.astype(jnp.float32), beta.astype(jnp.float32)], axis=1)

    cache_bytes = _padded_bytes((n_tiles, b_tile, c_out, l_out))
    use_cache = cache_bytes <= _Y_CACHE_BUDGET

    kernel = _make_conv_bn_kernel(
        ksize=ksize, c_out=c_out, l_out=l_out, out_pad=out_pad, b_tile=b_tile,
        inv_m=1.0 / float(n_batch * l_out), relu=relu,
        has_residual=residual is not None, use_cache=use_cache)

    if use_cache:
        # Phase 1 reads y from the VMEM cache -> park the x DMA on block 0.
        x_index = lambda p, n: ((1 - p) * n, 0, 0)
    else:
        x_index = lambda p, n: (n, 0, 0)

    in_specs = [
        pl.BlockSpec((b_tile, c_in, l_in), x_index),
        # weights / BN affine: constant block index -> fetched once, resident.
        pl.BlockSpec((c_out, ksize * c_in), lambda p, n: (0, 0)),
        pl.BlockSpec((c_out, 2), lambda p, n: (0, 0)),
    ]
    args = [x, w_mat, gb]
    if residual is not None:
        # Only read in phase 1: parked on block 0 during phase 0 (index n * p).
        in_specs.append(
            pl.BlockSpec((b_tile, c_out, l_out), lambda p, n: (n * p, 0, 0)))
        args.append(residual)

    scratch_shapes = []
    if use_cache:
        scratch_shapes.append(
            pltpu.VMEM((n_tiles, b_tile, c_out, l_out), jnp.float32))
    scratch_shapes.append(pltpu.VMEM((c_out, 2), jnp.float32))

    # Explicit VMEM limit with headroom (double-buffered blocks + scratch).
    est = 2 * _padded_bytes((b_tile, c_in, l_in))
    est += 2 * _padded_bytes((c_out, ksize * c_in))
    est += 2 * _padded_bytes((c_out, 2))
    if residual is not None:
        est += 2 * _padded_bytes((b_tile, c_out, l_out))
    est += 2 * _padded_bytes((b_tile, c_out, l_store))
    if use_cache:
        est += cache_bytes
    est += _padded_bytes((c_out, 2))
    vmem_limit = int(min(max(2 * est + (4 << 20), 16 << 20), _VMEM_LIMIT_CAP))

    return pl.pallas_call(
        kernel,
        out_shape=jax.ShapeDtypeStruct((n_batch, c_out, l_store), jnp.float32),
        grid=(2, n_tiles),
        in_specs=in_specs,
        # n * p keeps all phase-0 steps on block 0, so each output block is
        # written back to HBM exactly once, carrying the final phase-1 data.
        out_specs=pl.BlockSpec((b_tile, c_out, l_store), lambda p, n: (n * p, 0, 0)),
        scratch_shapes=scratch_shapes,
        # Both axes sequential: BN statistics are global over the batch, so
        # phase 0 must fully precede phase 1 (see v7x TODO above).
        compiler_params=pltpu.CompilerParams(
            dimension_semantics=("arbitrary", "arbitrary"),
            vmem_limit_bytes=vmem_limit),
    )(*args)


def iblock_forward(x, params):
    """IBlock: out = relu(branch0(x) + branch1(x)); ReLUs / add fused in-kernel."""
    # branch0: Conv1d(in->out, pad=0) + BN
    x0 = conv1d_bn_act(x, params["w0"], params["g0"], params["b0"],
                       relu=False, out_pad=0)
    # branch1[0]: Conv1d(in->in, pad=0) + BN + ReLU, emitted pre-padded by 4
    h = conv1d_bn_act(x, params["w1"], params["g1"], params["b1"],
                      relu=True, out_pad=PAD)
    # branch1[1]: Conv1d(in->in, pad=4) + BN + ReLU, emitted pre-padded by 4
    h = conv1d_bn_act(h, params["w2"], params["g2"], params["b2"],
                      relu=True, out_pad=PAD)
    # branch1[2]: Conv1d(in->out, pad=4) + BN, then + branch0 and final ReLU
    return conv1d_bn_act(h, params["w3"], params["g3"], params["b3"],
                         relu=True, out_pad=0, residual=x0)


# ------------------------- pure-JAX reference -------------------------

def _conv_bn_ref(x, w, g, b, padding):
    y = jax.lax.conv_general_dilated(
        x, w, window_strides=(1,), padding=[(padding, padding)],
        dimension_numbers=("NCH", "OIH", "NCH"))
    mean = jnp.mean(y, axis=(0, 2), keepdims=True)
    var = jnp.var(y, axis=(0, 2), keepdims=True)
    return (y - mean) * jax.lax.rsqrt(var + BN_EPS) * g[None, :, None] \
        + b[None, :, None]


def _iblock_ref(x, p):
    x0 = _conv_bn_ref(x, p["w0"], p["g0"], p["b0"], 0)
    h = jax.nn.relu(_conv_bn_ref(x, p["w1"], p["g1"], p["b1"], 0))
    h = jax.nn.relu(_conv_bn_ref(h, p["w2"], p["g2"], p["b2"], 4))
    x1 = _conv_bn_ref(h, p["w3"], p["g3"], p["b3"], 4)
    return jax.nn.relu(x0 + x1)


if __name__ == "__main__":
    IN_PLANES, OUT_PLANES = 4, 8
    N, L = 2, 16

    key = jax.random.PRNGKey(0)
    keys = jax.random.split(key, 13)
    x = jax.random.normal(keys[0], (N, IN_PLANES, L), dtype=jnp.float32)

    def make_conv(kw, kg, kb, c_in, c_out):
        w = jax.random.normal(kw, (c_out, c_in, KSIZE), dtype=jnp.float32) * 0.1
        g = 1.0 + 0.1 * jax.random.normal(kg, (c_out,), dtype=jnp.float32)
        b = 0.1 * jax.random.normal(kb, (c_out,), dtype=jnp.float32)
        return w, g, b

    w0, g0, b0 = make_conv(keys[1], keys[2], keys[3], IN_PLANES, OUT_PLANES)
    w1, g1, b1 = make_conv(keys[4], keys[5], keys[6], IN_PLANES, IN_PLANES)
    w2, g2, b2 = make_conv(keys[7], keys[8], keys[9], IN_PLANES, IN_PLANES)
    w3, g3, b3 = make_conv(keys[10], keys[11], keys[12], IN_PLANES, OUT_PLANES)
    params = dict(w0=w0, g0=g0, b0=b0, w1=w1, g1=g1, b1=b1,
                  w2=w2, g2=g2, b2=b2, w3=w3, g3=g3, b3=b3)

    out = jax.jit(iblock_forward)(x, params)
    out = jax.block_until_ready(out)

    ref = _iblock_ref(x, params)
    assert out.shape == ref.shape == (N, OUT_PLANES, L - (KSIZE - 1)), \
        (out.shape, ref.shape)
    err = float(jnp.max(jnp.abs(out - ref)))
    assert err < 5e-4, f"max abs error vs reference: {err}"

    print("KERNEL_OK")
</pallas_src>

<mosaic_0001>
module attributes {stable_mosaic.version = 11 : i64} {
  func.func @kernel(%arg0: i32, %arg1: i32, %arg2: memref<2x4x16xf32, #tpu.memory_space<vmem>>, %arg3: memref<4x36xf32, #tpu.memory_space<vmem>>, %arg4: memref<4x2xf32, #tpu.memory_space<vmem>>, %arg5: memref<2x4x16xf32, #tpu.memory_space<vmem>>, %arg6: memref<1x2x4x8xf32, #tpu.memory_space<vmem>>, %arg7: memref<4x2xf32, #tpu.memory_space<vmem>>) attributes {dimension_semantics = [#tpu.dimension_semantics<arbitrary>, #tpu.dimension_semantics<arbitrary>], iteration_bounds = array<i64: 2, 1>, scalar_prefetch = 0 : i64, scratch_operands = 2 : i64, tpu.core_type = #tpu.core_type<tc>, window_params = [{transform_indices = @transform_0, window_bounds = array<i64: 2, 4, 16>}, {pipeline_mode = #tpu.pipeline_mode<synchronous>, transform_indices = @transform_1, window_bounds = array<i64: 4, 36>}, {pipeline_mode = #tpu.pipeline_mode<synchronous>, transform_indices = @transform_2, window_bounds = array<i64: 4, 2>}, {transform_indices = @transform_3, window_bounds = array<i64: 2, 4, 16>}]} {
    %c0_i32 = arith.constant 0 : i32
    %0 = arith.cmpi eq, %arg0, %c0_i32 : i32
    %c0_i32_0 = arith.constant 0 : i32
    %1 = arith.cmpi eq, %arg1, %c0_i32_0 : i32
    %2 = arith.andi %0, %1 : i1
    %3 = arith.extui %2 : i1 to i32
    %c0_i32_1 = arith.constant 0 : i32
    %4 = arith.cmpi ne, %3, %c0_i32_1 : i32
    scf.if %4 {
      %cst = arith.constant 0.000000e+00 : f32
      %11 = vector.broadcast %cst : f32 to vector<4x2xf32>
      %c0 = arith.constant 0 : index
      %c0_5 = arith.constant 0 : index
      %12 = vector.load %arg7[%c0, %c0_5] : memref<4x2xf32, #tpu.memory_space<vmem>>, vector<4x2xf32>
      tpu.vector_store %arg7[%c0, %c0_5], %11 {strides = array<i32>} : memref<4x2xf32, #tpu.memory_space<vmem>>, vector<4x2xf32>,
    } else {
    }
    %c0_i32_2 = arith.constant 0 : i32
    %5 = arith.cmpi eq, %arg0, %c0_i32_2 : i32
    %6 = arith.extui %5 : i1 to i32
    %c0_i32_3 = arith.constant 0 : i32
    %7 = arith.cmpi ne, %6, %c0_i32_3 : i32
    scf.if %7 {
      %c0 = arith.constant 0 : index
      %c0_5 = arith.constant 0 : index
      %11 = vector.load %arg3[%c0, %c0_5] : memref<4x36xf32, #tpu.memory_space<vmem>>, vector<4x36xf32>
      %c0_6 = arith.constant 0 : index
      %c0_7 = arith.constant 0 : index
      %c0_8 = arith.constant 0 : index
      %12 = vector.load %arg2[%c0_6, %c0_7, %c0_8] : memref<2x4x16xf32, #tpu.memory_space<vmem>>, vector<1x4x8xf32>
      %13 = vector.shape_cast %12 : vector<1x4x8xf32> to vector<4x8xf32>
      %c0_9 = arith.constant 0 : index
      %c0_10 = arith.constant 0 : index
      %c1 = arith.constant 1 : index
      %14 = vector.load %arg2[%c0_9, %c0_10, %c1] : memref<2x4x16xf32, #tpu.memory_space<vmem>>, vector<1x4x8xf32>
      %15 = vector.shape_cast %14 : vector<1x4x8xf32> to vector<4x8xf32>
      %c0_11 = arith.constant 0 : index
      %c0_12 = arith.constant 0 : index
      %c2 = arith.constant 2 : index
      %16 = vector.load %arg2[%c0_11, %c0_12, %c2] : memref<2x4x16xf32, #tpu.memory_space<vmem>>, vector<1x4x8xf32>
      %17 = vector.shape_cast %16 : vector<1x4x8xf32> to vector<4x8xf32>
      %c0_13 = arith.constant 0 : index
      %c0_14 = arith.constant 0 : index
      %c3 = arith.constant 3 : index
      %18 = vector.load %arg2[%c0_13, %c0_14, %c3] : memref<2x4x16xf32, #tpu.memory_space<vmem>>, vector<1x4x8xf32>
      %19 = vector.shape_cast %18 : vector<1x4x8xf32> to vector<4x8xf32>
      %c0_15 = arith.constant 0 : index
      %c0_16 = arith.constant 0 : index
      %c4 = arith.constant 4 : index
      %20 = vector.load %arg2[%c0_15, %c0_16, %c4] : memref<2x4x16xf32, #tpu.memory_space<vmem>>, vector<1x4x8xf32>
      %21 = vector.shape_cast %20 : vector<1x4x8xf32> to vector<4x8xf32>
      %c0_17 = arith.constant 0 : index
      %c0_18 = arith.constant 0 : index
      %c5 = arith.constant 5 : index
      %22 = vector.load %arg2[%c0_17, %c0_18, %c5] : memref<2x4x16xf32, #tpu.memory_space<vmem>>, vector<1x4x8xf32>
      %23 = vector.shape_cast %22 : vector<1x4x8xf32> to vector<4x8xf32>
      %c0_19 = arith.constant 0 : index
      %c0_20 = arith.constant 0 : index
      %c6 = arith.constant 6 : index
      %24 = vector.load %arg2[%c0_19, %c0_20, %c6] : memref<2x4x16xf32, #tpu.memory_space<vmem>>, vector<1x4x8xf32>
      %25 = vector.shape_cast %24 : vector<1x4x8xf32> to vector<4x8xf32>
      %c0_21 = arith.constant 0 : index
      %c0_22 = arith.constant 0 : index
      %c7 = arith.constant 7 : index
      %26 = vector.load %arg2[%c0_21, %c0_22, %c7] : memref<2x4x16xf32, #tpu.memory_space<vmem>>, vector<1x4x8xf32>
      %27 = vector.shape_cast %26 : vector<1x4x8xf32> to vector<4x8xf32>
      %c0_23 = arith.constant 0 : index
      %c0_24 = arith.constant 0 : index
      %c8 = arith.constant 8 : index
      %28 = vector.load %arg2[%c0_23, %c0_24, %c8] : memref<2x4x16xf32, #tpu.memory_space<vmem>>, vector<1x4x8xf32>
      %29 = vector.shape_cast %28 : vector<1x4x8xf32> to vector<4x8xf32>
      %30 = tpu.concatenate %13, %15, %17, %19, %21, %23, %25, %27, %29 in 0 : vector<4x8xf32>, vector<4x8xf32>, vector<4x8xf32>, vector<4x8xf32>, vector<4x8xf32>, vector<4x8xf32>, vector<4x8xf32>, vector<4x8xf32>, vector<4x8xf32> -> vector<36x8xf32>
      %cst = arith.constant dense<0.000000e+00> : vector<4x8xf32>
      %31 = tpu.matmul %11, %30, %cst {dimension_numbers = #tpu.dot_dimension_numbers<[1], [0], [0], [1], [0, 0, 1, 1], [], []>} : vector<4x36xf32>, vector<36x8xf32>, vector<4x8xf32> -> vector<4x8xf32>
      %c1_25 = arith.constant 1 : index
      %c0_26 = arith.constant 0 : index
      %c0_27 = arith.constant 0 : index
      %32 = vector.load %arg2[%c1_25, %c0_26, %c0_27] : memref<2x4x16xf32, #tpu.memory_space<vmem>>, vector<1x4x8xf32>
      %33 = vector.shape_cast %32 : vector<1x4x8xf32> to vector<4x8xf32>
      %c1_28 = arith.constant 1 : index
      %c0_29 = arith.constant 0 : index
      %c1_30 = arith.constant 1 : index
      %34 = vector.load %arg2[%c1_28, %c0_29, %c1_30] : memref<2x4x16xf32, #tpu.memory_space<vmem>>, vector<1x4x8xf32>
      %35 = vector.shape_cast %34 : vector<1x4x8xf32> to vector<4x8xf32>
      %c1_31 = arith.constant 1 : index
      %c0_32 = arith.constant 0 : index
      %c2_33 = arith.constant 2 : index
      %36 = vector.load %arg2[%c1_31, %c0_32, %c2_33] : memref<2x4x16xf32, #tpu.memory_space<vmem>>, vector<1x4x8xf32>
      %37 = vector.shape_cast %36 : vector<1x4x8xf32> to vector<4x8xf32>
      %c1_34 = arith.constant 1 : index
      %c0_35 = arith.constant 0 : index
      %c3_36 = arith.constant 3 : index
      %38 = vector.load %arg2[%c1_34, %c0_35, %c3_36] : memref<2x4x16xf32, #tpu.memory_space<vmem>>, vector<1x4x8xf32>
      %39 = vector.shape_cast %38 : vector<1x4x8xf32> to vector<4x8xf32>
      %c1_37 = arith.constant 1 : index
      %c0_38 = arith.constant 0 : index
      %c4_39 = arith.constant 4 : index
      %40 = vector.load %arg2[%c1_37, %c0_38, %c4_39] : memref<2x4x16xf32, #tpu.memory_space<vmem>>, vector<1x4x8xf32>
      %41 = vector.shape_cast %40 : vector<1x4x8xf32> to vector<4x8xf32>
      %c1_40 = arith.constant 1 : index
      %c0_41 = arith.constant 0 : index
      %c5_42 = arith.constant 5 : index
      %42 = vector.load %arg2[%c1_40, %c0_41, %c5_42] : memref<2x4x16xf32, #tpu.memory_space<vmem>>, vector<1x4x8xf32>
      %43 = vector.shape_cast %42 : vector<1x4x8xf32> to vector<4x8xf32>
      %c1_43 = arith.constant 1 : index
      %c0_44 = arith.constant 0 : index
      %c6_45 = arith.constant 6 : index
      %44 = vector.load %arg2[%c1_43, %c0_44, %c6_45] : memref<2x4x16xf32, #tpu.memory_space<vmem>>, vector<1x4x8xf32>
      %45 = vector.shape_cast %44 : vector<1x4x8xf32> to vector<4x8xf32>
      %c1_46 = arith.constant 1 : index
      %c0_47 = arith.constant 0 : index
      %c7_48 = arith.constant 7 : index
      %46 = vector.load %arg2[%c1_46, %c0_47, %c7_48] : memref<2x4x16xf32, #tpu.memory_space<vmem>>, vector<1x4x8xf32>
      %47 = vector.shape_cast %46 : vector<1x4x8xf32> to vector<4x8xf32>
      %c1_49 = arith.constant 1 : index
      %c0_50 = arith.constant 0 : index
      %c8_51 = arith.constant 8 : index
      %48 = vector.load %arg2[%c1_49, %c0_50, %c8_51] : memref<2x4x16xf32, #tpu.memory_space<vmem>>, vector<1x4x8xf32>
      %49 = vector.shape_cast %48 : vector<1x4x8xf32> to vector<4x8xf32>
      %50 = tpu.concatenate %33, %35, %37, %39, %41, %43, %45, %47, %49 in 0 : vector<4x8xf32>, vector<4x8xf32>, vector<4x8xf32>, vector<4x8xf32>, vector<4x8xf32>, vector<4x8xf32>, vector<4x8xf32>, vector<4x8xf32>, vector<4x8xf32> -> vector<36x8xf32>
      %cst_52 = arith.constant dense<0.000000e+00> : vector<4x8xf32>
      %51 = tpu.matmul %11, %50, %cst_52 {dimension_numbers = #tpu.dot_dimension_numbers<[1], [0], [0], [1], [0, 0, 1, 1], [], []>} : vector<4x36xf32>, vector<36x8xf32>, vector<4x8xf32> -> vector<4x8xf32>
      %52 = vector.shape_cast %31 : vector<4x8xf32> to vector<1x4x8xf32>
      %53 = vector.shape_cast %51 : vector<4x8xf32> to vector<1x4x8xf32>
      %54 = tpu.concatenate %52, %53 in 0 : vector<1x4x8xf32>, vector<1x4x8xf32> -> vector<2x4x8xf32>
      %cst_53 = arith.constant dense<0.000000e+00> : vector<2x4xf32>
      %55 = vector.multi_reduction <add>, %54, %cst_53 [2] : vector<2x4x8xf32> to vector<2x4xf32>
      %56 = vector.shape_cast %55 : vector<2x4xf32> to vector<2x4x1xf32>
      %cst_54 = arith.constant dense<0.000000e+00> : vector<4x1xf32>
      %57 = vector.multi_reduction <add>, %56, %cst_54 [0] : vector<2x4x1xf32> to vector<4x1xf32>
      %58 = arith.mulf %54, %54 : vector<2x4x8xf32>
      %cst_55 = arith.constant dense<0.000000e+00> : vector<2x4xf32>
      %59 = vector.multi_reduction <add>, %58, %cst_55 [2] : vector<2x4x8xf32> to vector<2x4xf32>
      %60 = vector.shape_cast %59 : vector<2x4xf32> to vector<2x4x1xf32>
      %cst_56 = arith.constant dense<0.000000e+00> : vector<4x1xf32>
      %61 = vector.multi_reduction <add>, %60, %cst_56 [0] : vector<2x4x1xf32> to vector<4x1xf32>
      %c0_57 = arith.constant 0 : index
      %c0_58 = arith.constant 0 : index
      %62 = vector.load %arg7[%c0_57, %c0_58] : memref<4x2xf32, #tpu.memory_space<vmem>>, vector<4x2xf32>
      %63 = tpu.concatenate %57, %61 in 1 : vector<4x1xf32>, vector<4x1xf32> -> vector<4x2xf32>
      %64 = arith.addf %62, %63 : vector<4x2xf32>
      %c0_59 = arith.constant 0 : index
      %c0_60 = arith.constant 0 : index
      %65 = vector.load %arg7[%c0_59, %c0_60] : memref<4x2xf32, #tpu.memory_space<vmem>>, vector<4x2xf32>
      tpu.vector_store %arg7[%c0_59, %c0_60], %64 {strides = array<i32>} : memref<4x2xf32, #tpu.memory_space<vmem>>, vector<4x2xf32>,
      %66 = arith.index_cast %arg1 : i32 to index
      %c0_61 = arith.constant 0 : index
      %c0_62 = arith.constant 0 : index
      %c0_63 = arith.constant 0 : index
      %67 = vector.load %arg6[%66, %c0_61, %c0_62, %c0_63] : memref<1x2x4x8xf32, #tpu.memory_space<vmem>>, vector<1x2x4x8xf32>
      %68 = vector.shape_cast %67 : vector<1x2x4x8xf32> to vector<2x4x8xf32>
      %69 = vector.shape_cast %54 : vector<2x4x8xf32> to vector<1x2x4x8xf32>
      tpu.vector_store %arg6[%66, %c0_61, %c0_62, %c0_63], %69 {strides = array<i32>} : memref<1x2x4x8xf32, #tpu.memory_space<vmem>>, vector<1x2x4x8xf32>,
    } else {
    }
    %c1_i32 = arith.constant 1 : i32
    %8 = arith.cmpi eq, %arg0, %c1_i32 : i32
    %9 = arith.extui %8 : i1 to i32
    %c0_i32_4 = arith.constant 0 : i32
    %10 = arith.cmpi ne, %9, %c0_i32_4 : i32
    scf.if %10 {
      %11 = arith.index_cast %arg1 : i32 to index
      %c0 = arith.constant 0 : index
      %c0_5 = arith.constant 0 : index
      %c0_6 = arith.constant 0 : index
      %12 = vector.load %arg6[%11, %c0, %c0_5, %c0_6] : memref<1x2x4x8xf32, #tpu.memory_space<vmem>>, vector<1x2x4x8xf32>
      %13 = vector.shape_cast %12 : vector<1x2x4x8xf32> to vector<2x4x8xf32>
      %c0_7 = arith.constant 0 : index
      %c0_8 = arith.constant 0 : index
      %14 = vector.load %arg7[%c0_7, %c0_8] : memref<4x2xf32, #tpu.memory_space<vmem>>, vector<4x2xf32>
      %15 = vector.extract_strided_slice %14 {offsets = [0, 0], sizes = [4, 1], strides = [1, 1]} : vector<4x2xf32> to vector<4x1xf32>
      %cst = arith.constant 6.250000e-02 : f32
      %16 = vector.broadcast %cst : f32 to vector<4x1xf32>
      %17 = arith.mulf %15, %16 : vector<4x1xf32>
      %18 = vector.extract_strided_slice %14 {offsets = [0, 1], sizes = [4, 1], strides = [1, 1]} : vector<4x2xf32> to vector<4x1xf32>
      %cst_9 = arith.constant 6.250000e-02 : f32
      %19 = vector.broadcast %cst_9 : f32 to vector<4x1xf32>
      %20 = arith.mulf %18, %19 : vector<4x1xf32>
      %21 = arith.mulf %17, %17 : vector<4x1xf32>
      %22 = arith.subf %20, %21 : vector<4x1xf32>
      %c0_10 = arith.constant 0 : index
      %c0_11 = arith.constant 0 : index
      %23 = vector.load %arg4[%c0_10, %c0_11] : memref<4x2xf32, #tpu.memory_space<vmem>>, vector<4x1xf32>
      %cst_12 = arith.constant 1.000000e-03 : f32
      %24 = vector.broadcast %cst_12 : f32 to vector<4x1xf32>
      %25 = arith.addf %22, %24 : vector<4x1xf32>
      %26 = math.rsqrt %25 : vector<4x1xf32>
      %27 = arith.mulf %23, %26 : vector<4x1xf32>
      %c0_13 = arith.constant 0 : index
      %c1 = arith.constant 1 : index
      %28 = vector.load %arg4[%c0_13, %c1] : memref<4x2xf32, #tpu.memory_space<vmem>>, vector<4x1xf32>
      %29 = arith.mulf %17, %27 : vector<4x1xf32>
      %30 = arith.subf %28, %29 : vector<4x1xf32>
      %31 = vector.shape_cast %27 : vector<4x1xf32> to vector<1x4x1xf32>
      %32 = vector.broadcast %31 : vector<1x4x1xf32> to vector<2x4x8xf32>
      %33 = arith.mulf %13, %32 : vector<2x4x8xf32>
      %34 = vector.shape_cast %30 : vector<4x1xf32> to vector<1x4x1xf32>
      %35 = vector.broadcast %34 : vector<1x4x1xf32> to vector<2x4x8xf32>
      %36 = arith.addf %33, %35 : vector<2x4x8xf32>
      %cst_14 = arith.constant 0.000000e+00 : f32
      %37 = vector.broadcast %cst_14 : f32 to vector<2x4x8xf32>
      %38 = arith.maximumf %36, %37 : vector<2x4x8xf32>
      %cst_15 = arith.constant 0.000000e+00 : f32
      %39 = vector.broadcast %cst_15 : f32 to vector<2x4x4xf32>
      %40 = tpu.concatenate %39, %38, %39 in 2 : vector<2x4x4xf32>, vector<2x4x8xf32>, vector<2x4x4xf32> -> vector<2x4x16xf32>
      %c0_16 = arith.constant 0 : index
      %c0_17 = arith.constant 0 : index
      %c0_18 = arith.constant 0 : index
      %41 = vector.load %arg5[%c0_16, %c0_17, %c0_18] : memref<2x4x16xf32, #tpu.memory_space<vmem>>, vector<2x4x16xf32>
      tpu.vector_store %arg5[%c0_16, %c0_17, %c0_18], %40 {strides = array<i32>} : memref<2x4x16xf32, #tpu.memory_space<vmem>>, vector<2x4x16xf32>,
    } else {
    }
    return
  }
  func.func @transform_0(%arg0: i32, %arg1: i32) -> (i32, i32, i32) {
    %c1_i32 = arith.constant 1 : i32
    %0 = arith.subi %c1_i32, %arg0 : i32
    %1 = arith.muli %0, %arg1 : i32
    %c0_i32 = arith.constant 0 : i32
    %c0_i32_0 = arith.constant 0 : i32
    %c0_i32_1 = arith.constant 0 : i32
    return %1, %c0_i32, %c0_i32_0 : i32, i32, i32
  }
  func.func @transform_1(%arg0: i32, %arg1: i32) -> (i32, i32) {
    %c0_i32 = arith.constant 0 : i32
    %c0_i32_0 = arith.constant 0 : i32
    %c0_i32_1 = arith.constant 0 : i32
    return %c0_i32, %c0_i32_0 : i32, i32
  }
  func.func @transform_2(%arg0: i32, %arg1: i32) -> (i32, i32) {
    %c0_i32 = arith.constant 0 : i32
    %c0_i32_0 = arith.constant 0 : i32
    %c0_i32_1 = arith.constant 0 : i32
    return %c0_i32, %c0_i32_0 : i32, i32
  }
  func.func @transform_3(%arg0: i32, %arg1: i32) -> (i32, i32, i32) {
    %0 = arith.muli %arg1, %arg0 : i32
    %c0_i32 = arith.constant 0 : i32
    %c0_i32_0 = arith.constant 0 : i32
    %c0_i32_1 = arith.constant 0 : i32
    return %0, %c0_i32, %c0_i32_0 : i32, i32, i32
  }
}

module attributes {stable_mosaic.version = 11 : i64} {
  func.func @kernel(%arg0: i32, %arg1: i32, %arg2: memref<2x4x16xf32, #tpu.memory_space<vmem>>, %arg3: memref<8x36xf32, #tpu.memory_space<vmem>>, %arg4: memref<8x2xf32, #tpu.memory_space<vmem>>, %arg5: memref<2x8x8xf32, #tpu.memory_space<vmem>>, %arg6: memref<1x2x8x8xf32, #tpu.memory_space<vmem>>, %arg7: memref<8x2xf32, #tpu.memory_space<vmem>>) attributes {dimension_semantics = [#tpu.dimension_semantics<arbitrary>, #tpu.dimension_semantics<arbitrary>], iteration_bounds = array<i64: 2, 1>, scalar_prefetch = 0 : i64, scratch_operands = 2 : i64, tpu.core_type = #tpu.core_type<tc>, window_params = [{transform_indices = @transform_0, window_bounds = array<i64: 2, 4, 16>}, {pipeline_mode = #tpu.pipeline_mode<synchronous>, transform_indices = @transform_1, window_bounds = array<i64: 8, 36>}, {pipeline_mode = #tpu.pipeline_mode<synchronous>, transform_indices = @transform_2, window_bounds = array<i64: 8, 2>}, {transform_indices = @transform_3, window_bounds = array<i64: 2, 8, 8>}]} {
    %c0_i32 = arith.constant 0 : i32
    %0 = arith.cmpi eq, %arg0, %c0_i32 : i32
    %c0_i32_0 = arith.constant 0 : i32
    %1 = arith.cmpi eq, %arg1, %c0_i32_0 : i32
    %2 = arith.andi %0, %1 : i1
    %3 = arith.extui %2 : i1 to i32
    %c0_i32_1 = arith.constant 0 : i32
    %4 = arith.cmpi ne, %3, %c0_i32_1 : i32
    scf.if %4 {
      %cst = arith.constant 0.000000e+00 : f32
      %11 = vector.broadcast %cst : f32 to vector<8x2xf32>
      %c0 = arith.constant 0 : index
      %c0_5 = arith.constant 0 : index
      %12 = vector.load %arg7[%c0, %c0_5] : memref<8x2xf32, #tpu.memory_space<vmem>>, vector<8x2xf32>
      tpu.vector_store %arg7[%c0, %c0_5], %11 {strides = array<i32>} : memref<8x2xf32, #tpu.memory_space<vmem>>, vector<8x2xf32>,
    } else {
    }
    %c0_i32_2 = arith.constant 0 : i32
    %5 = arith.cmpi eq, %arg0, %c0_i32_2 : i32
    %6 = arith.extui %5 : i1 to i32
    %c0_i32_3 = arith.constant 0 : i32
    %7 = arith.cmpi ne, %6, %c0_i32_3 : i32
    scf.if %7 {
      %c0 = arith.constant 0 : index
      %c0_5 = arith.constant 0 : index
      %11 = vector.load %arg3[%c0, %c0_5] : memref<8x36xf32, #tpu.memory_space<vmem>>, vector<8x36xf32>
      %c0_6 = arith.constant 0 : index
      %c0_7 = arith.constant 0 : index
      %c0_8 = arith.constant 0 : index
      %12 = vector.load %arg2[%c0_6, %c0_7, %c0_8] : memref<2x4x16xf32, #tpu.memory_space<vmem>>, vector<1x4x8xf32>
      %13 = vector.shape_cast %12 : vector<1x4x8xf32> to vector<4x8xf32>
      %c0_9 = arith.constant 0 : index
      %c0_10 = arith.constant 0 : index
      %c1 = arith.constant 1 : index
      %14 = vector.load %arg2[%c0_9, %c0_10, %c1] : memref<2x4x16xf32, #tpu.memory_space<vmem>>, vector<1x4x8xf32>
      %15 = vector.shape_cast %14 : vector<1x4x8xf32> to vector<4x8xf32>
      %c0_11 = arith.constant 0 : index
      %c0_12 = arith.constant 0 : index
      %c2 = arith.constant 2 : index
      %16 = vector.load %arg2[%c0_11, %c0_12, %c2] : memref<2x4x16xf32, #tpu.memory_space<vmem>>, vector<1x4x8xf32>
      %17 = vector.shape_cast %16 : vector<1x4x8xf32> to vector<4x8xf32>
      %c0_13 = arith.constant 0 : index
      %c0_14 = arith.constant 0 : index
      %c3 = arith.constant 3 : index
      %18 = vector.load %arg2[%c0_13, %c0_14, %c3] : memref<2x4x16xf32, #tpu.memory_space<vmem>>, vector<1x4x8xf32>
      %19 = vector.shape_cast %18 : vector<1x4x8xf32> to vector<4x8xf32>
      %c0_15 = arith.constant 0 : index
      %c0_16 = arith.constant 0 : index
      %c4 = arith.constant 4 : index
      %20 = vector.load %arg2[%c0_15, %c0_16, %c4] : memref<2x4x16xf32, #tpu.memory_space<vmem>>, vector<1x4x8xf32>
      %21 = vector.shape_cast %20 : vector<1x4x8xf32> to vector<4x8xf32>
      %c0_17 = arith.constant 0 : index
      %c0_18 = arith.constant 0 : index
      %c5 = arith.constant 5 : index
      %22 = vector.load %arg2[%c0_17, %c0_18, %c5] : memref<2x4x16xf32, #tpu.memory_space<vmem>>, vector<1x4x8xf32>
      %23 = vector.shape_cast %22 : vector<1x4x8xf32> to vector<4x8xf32>
      %c0_19 = arith.constant 0 : index
      %c0_20 = arith.constant 0 : index
      %c6 = arith.constant 6 : index
      %24 = vector.load %arg2[%c0_19, %c0_20, %c6] : memref<2x4x16xf32, #tpu.memory_space<vmem>>, vector<1x4x8xf32>
      %25 = vector.shape_cast %24 : vector<1x4x8xf32> to vector<4x8xf32>
      %c0_21 = arith.constant 0 : index
      %c0_22 = arith.constant 0 : index
      %c7 = arith.constant 7 : index
      %26 = vector.load %arg2[%c0_21, %c0_22, %c7] : memref<2x4x16xf32, #tpu.memory_space<vmem>>, vector<1x4x8xf32>
      %27 = vector.shape_cast %26 : vector<1x4x8xf32> to vector<4x8xf32>
      %c0_23 = arith.constant 0 : index
      %c0_24 = arith.constant 0 : index
      %c8 = arith.constant 8 : index
      %28 = vector.load %arg2[%c0_23, %c0_24, %c8] : memref<2x4x16xf32, #tpu.memory_space<vmem>>, vector<1x4x8xf32>
      %29 = vector.shape_cast %28 : vector<1x4x8xf32> to vector<4x8xf32>
      %30 = tpu.concatenate %13, %15, %17, %19, %21, %23, %25, %27, %29 in 0 : vector<4x8xf32>, vector<4x8xf32>, vector<4x8xf32>, vector<4x8xf32>, vector<4x8xf32>, vector<4x8xf32>, vector<4x8xf32>, vector<4x8xf32>, vector<4x8xf32> -> vector<36x8xf32>
      %cst = arith.constant dense<0.000000e+00> : vector<8x8xf32>
      %31 = tpu.matmul %11, %30, %cst {dimension_numbers = #tpu.dot_dimension_numbers<[1], [0], [0], [1], [0, 0, 1, 1], [], []>} : vector<8x36xf32>, vector<36x8xf32>, vector<8x8xf32> -> vector<8x8xf32>
      %c1_25 = arith.constant 1 : index
      %c0_26 = arith.constant 0 : index
      %c0_27 = arith.constant 0 : index
      %32 = vector.load %arg2[%c1_25, %c0_26, %c0_27] : memref<2x4x16xf32, #tpu.memory_space<vmem>>, vector<1x4x8xf32>
      %33 = vector.shape_cast %32 : vector<1x4x8xf32> to vector<4x8xf32>
      %c1_28 = arith.constant 1 : index
      %c0_29 = arith.constant 0 : index
      %c1_30 = arith.constant 1 : index
      %34 = vector.load %arg2[%c1_28, %c0_29, %c1_30] : memref<2x4x16xf32, #tpu.memory_space<vmem>>, vector<1x4x8xf32>
      %35 = vector.shape_cast %34 : vector<1x4x8xf32> to vector<4x8xf32>
      %c1_31 = arith.constant 1 : index
      %c0_32 = arith.constant 0 : index
      %c2_33 = arith.constant 2 : index
      %36 = vector.load %arg2[%c1_31, %c0_32, %c2_33] : memref<2x4x16xf32, #tpu.memory_space<vmem>>, vector<1x4x8xf32>
      %37 = vector.shape_cast %36 : vector<1x4x8xf32> to vector<4x8xf32>
      %c1_34 = arith.constant 1 : index
      %c0_35 = arith.constant 0 : index
      %c3_36 = arith.constant 3 : index
      %38 = vector.load %arg2[%c1_34, %c0_35, %c3_36] : memref<2x4x16xf32, #tpu.memory_space<vmem>>, vector<1x4x8xf32>
      %39 = vector.shape_cast %38 : vector<1x4x8xf32> to vector<4x8xf32>
      %c1_37 = arith.constant 1 : index
      %c0_38 = arith.constant 0 : index
      %c4_39 = arith.constant 4 : index
      %40 = vector.load %arg2[%c1_37, %c0_38, %c4_39] : memref<2x4x16xf32, #tpu.memory_space<vmem>>, vector<1x4x8xf32>
      %41 = vector.shape_cast %40 : vector<1x4x8xf32> to vector<4x8xf32>
      %c1_40 = arith.constant 1 : index
      %c0_41 = arith.constant 0 : index
      %c5_42 = arith.constant 5 : index
      %42 = vector.load %arg2[%c1_40, %c0_41, %c5_42] : memref<2x4x16xf32, #tpu.memory_space<vmem>>, vector<1x4x8xf32>
      %43 = vector.shape_cast %42 : vector<1x4x8xf32> to vector<4x8xf32>
      %c1_43 = arith.constant 1 : index
      %c0_44 = arith.constant 0 : index
      %c6_45 = arith.constant 6 : index
      %44 = vector.load %arg2[%c1_43, %c0_44, %c6_45] : memref<2x4x16xf32, #tpu.memory_space<vmem>>, vector<1x4x8xf32>
      %45 = vector.shape_cast %44 : vector<1x4x8xf32> to vector<4x8xf32>
      %c1_46 = arith.constant 1 : index
      %c0_47 = arith.constant 0 : index
      %c7_48 = arith.constant 7 : index
      %46 = vector.load %arg2[%c1_46, %c0_47, %c7_48] : memref<2x4x16xf32, #tpu.memory_space<vmem>>, vector<1x4x8xf32>
      %47 = vector.shape_cast %46 : vector<1x4x8xf32> to vector<4x8xf32>
      %c1_49 = arith.constant 1 : index
      %c0_50 = arith.constant 0 : index
      %c8_51 = arith.constant 8 : index
      %48 = vector.load %arg2[%c1_49, %c0_50, %c8_51] : memref<2x4x16xf32, #tpu.memory_space<vmem>>, vector<1x4x8xf32>
      %49 = vector.shape_cast %48 : vector<1x4x8xf32> to vector<4x8xf32>
      %50 = tpu.concatenate %33, %35, %37, %39, %41, %43, %45, %47, %49 in 0 : vector<4x8xf32>, vector<4x8xf32>, vector<4x8xf32>, vector<4x8xf32>, vector<4x8xf32>, vector<4x8xf32>, vector<4x8xf32>, vector<4x8xf32>, vector<4x8xf32> -> vector<36x8xf32>
      %cst_52 = arith.constant dense<0.000000e+00> : vector<8x8xf32>
      %51 = tpu.matmul %11, %50, %cst_52 {dimension_numbers = #tpu.dot_dimension_numbers<[1], [0], [0], [1], [0, 0, 1, 1], [], []>} : vector<8x36xf32>, vector<36x8xf32>, vector<8x8xf32> -> vector<8x8xf32>
      %52 = vector.shape_cast %31 : vector<8x8xf32> to vector<1x8x8xf32>
      %53 = vector.shape_cast %51 : vector<8x8xf32> to vector<1x8x8xf32>
      %54 = tpu.concatenate %52, %53 in 0 : vector<1x8x8xf32>, vector<1x8x8xf32> -> vector<2x8x8xf32>
      %cst_53 = arith.constant dense<0.000000e+00> : vector<2x8xf32>
      %55 = vector.multi_reduction <add>, %54, %cst_53 [2] : vector<2x8x8xf32> to vector<2x8xf32>
      %56 = vector.shape_cast %55 : vector<2x8xf32> to vector<2x8x1xf32>
      %cst_54 = arith.constant dense<0.000000e+00> : vector<8x1xf32>
      %57 = vector.multi_reduction <add>, %56, %cst_54 [0] : vector<2x8x1xf32> to vector<8x1xf32>
      %58 = arith.mulf %54, %54 : vector<2x8x8xf32>
      %cst_55 = arith.constant dense<0.000000e+00> : vector<2x8xf32>
      %59 = vector.multi_reduction <add>, %58, %cst_55 [2] : vector<2x8x8xf32> to vector<2x8xf32>
      %60 = vector.shape_cast %59 : vector<2x8xf32> to vector<2x8x1xf32>
      %cst_56 = arith.constant dense<0.000000e+00> : vector<8x1xf32>
      %61 = vector.multi_reduction <add>, %60, %cst_56 [0] : vector<2x8x1xf32> to vector<8x1xf32>
      %c0_57 = arith.constant 0 : index
      %c0_58 = arith.constant 0 : index
      %62 = vector.load %arg7[%c0_57, %c0_58] : memref<8x2xf32, #tpu.memory_space<vmem>>, vector<8x2xf32>
      %63 = tpu.concatenate %57, %61 in 1 : vector<8x1xf32>, vector<8x1xf32> -> vector<8x2xf32>
      %64 = arith.addf %62, %63 : vector<8x2xf32>
      %c0_59 = arith.constant 0 : index
      %c0_60 = arith.constant 0 : index
      %65 = vector.load %arg7[%c0_59, %c0_60] : memref<8x2xf32, #tpu.memory_space<vmem>>, vector<8x2xf32>
      tpu.vector_store %arg7[%c0_59, %c0_60], %64 {strides = array<i32>} : memref<8x2xf32, #tpu.memory_space<vmem>>, vector<8x2xf32>,
      %66 = arith.index_cast %arg1 : i32 to index
      %c0_61 = arith.constant 0 : index
      %c0_62 = arith.constant 0 : index
      %c0_63 = arith.constant 0 : index
      %67 = vector.load %arg6[%66, %c0_61, %c0_62, %c0_63] : memref<1x2x8x8xf32, #tpu.memory_space<vmem>>, vector<1x2x8x8xf32>
      %68 = vector.shape_cast %67 : vector<1x2x8x8xf32> to vector<2x8x8xf32>
      %69 = vector.shape_cast %54 : vector<2x8x8xf32> to vector<1x2x8x8xf32>
      tpu.vector_store %arg6[%66, %c0_61, %c0_62, %c0_63], %69 {strides = array<i32>} : memref<1x2x8x8xf32, #tpu.memory_space<vmem>>, vector<1x2x8x8xf32>,
    } else {
    }
    %c1_i32 = arith.constant 1 : i32
    %8 = arith.cmpi eq, %arg0, %c1_i32 : i32
    %9 = arith.extui %8 : i1 to i32
    %c0_i32_4 = arith.constant 0 : i32
    %10 = arith.cmpi ne, %9, %c0_i32_4 : i32
    scf.if %10 {
      %11 = arith.index_cast %arg1 : i32 to index
      %c0 = arith.constant 0 : index
      %c0_5 = arith.constant 0 : index
      %c0_6 = arith.constant 0 : index
      %12 = vector.load %arg6[%11, %c0, %c0_5, %c0_6] : memref<1x2x8x8xf32, #tpu.memory_space<vmem>>, vector<1x2x8x8xf32>
      %13 = vector.shape_cast %12 : vector<1x2x8x8xf32> to vector<2x8x8xf32>
      %c0_7 = arith.constant 0 : index
      %c0_8 = arith.constant 0 : index
      %14 = vector.load %arg7[%c0_7, %c0_8] : memref<8x2xf32, #tpu.memory_space<vmem>>, vector<8x2xf32>
      %15 = vector.extract_strided_slice %14 {offsets = [0, 0], sizes = [8, 1], strides = [1, 1]} : vector<8x2xf32> to vector<8x1xf32>
      %cst = arith.constant 6.250000e-02 : f32
      %16 = vector.broadcast %cst : f32 to vector<8x1xf32>
      %17 = arith.mulf %15, %16 : vector<8x1xf32>
      %18 = vector.extract_strided_slice %14 {offsets = [0, 1], sizes = [8, 1], strides = [1, 1]} : vector<8x2xf32> to vector<8x1xf32>
      %cst_9 = arith.constant 6.250000e-02 : f32
      %19 = vector.broadcast %cst_9 : f32 to vector<8x1xf32>
      %20 = arith.mulf %18, %19 : vector<8x1xf32>
      %21 = arith.mulf %17, %17 : vector<8x1xf32>
      %22 = arith.subf %20, %21 : vector<8x1xf32>
      %c0_10 = arith.constant 0 : index
      %c0_11 = arith.constant 0 : index
      %23 = vector.load %arg4[%c0_10, %c0_11] : memref<8x2xf32, #tpu.memory_space<vmem>>, vector<8x1xf32>
      %cst_12 = arith.constant 1.000000e-03 : f32
      %24 = vector.broadcast %cst_12 : f32 to vector<8x1xf32>
      %25 = arith.addf %22, %24 : vector<8x1xf32>
      %26 = math.rsqrt %25 : vector<8x1xf32>
      %27 = arith.mulf %23, %26 : vector<8x1xf32>
      %c0_13 = arith.constant 0 : index
      %c1 = arith.constant 1 : index
      %28 = vector.load %arg4[%c0_13, %c1] : memref<8x2xf32, #tpu.memory_space<vmem>>, vector<8x1xf32>
      %29 = arith.mulf %17, %27 : vector<8x1xf32>
      %30 = arith.subf %28, %29 : vector<8x1xf32>
      %31 = vector.shape_cast %27 : vector<8x1xf32> to vector<1x8x1xf32>
      %32 = vector.broadcast %31 : vector<1x8x1xf32> to vector<2x8x8xf32>
      %33 = arith.mulf %13, %32 : vector<2x8x8xf32>
      %34 = vector.shape_cast %30 : vector<8x1xf32> to vector<1x8x1xf32>
      %35 = vector.broadcast %34 : vector<1x8x1xf32> to vector<2x8x8xf32>
      %36 = arith.addf %33, %35 : vector<2x8x8xf32>
      %c0_14 = arith.constant 0 : index
      %c0_15 = arith.constant 0 : index
      %c0_16 = arith.constant 0 : index
      %37 = vector.load %arg5[%c0_14, %c0_15, %c0_16] : memref<2x8x8xf32, #tpu.memory_space<vmem>>, vector<2x8x8xf32>
      tpu.vector_store %arg5[%c0_14, %c0_15, %c0_16], %36 {strides = array<i32>} : memref<2x8x8xf32, #tpu.memory_space<vmem>>, vector<2x8x8xf32>,
    } else {
    }
    return
  }
  func.func @transform_0(%arg0: i32, %arg1: i32) -> (i32, i32, i32) {
    %c1_i32 = arith.constant 1 : i32
    %0 = arith.subi %c1_i32, %arg0 : i32
    %1 = arith.muli %0, %arg1 : i32
    %c0_i32 = arith.constant 0 : i32
    %c0_i32_0 = arith.constant 0 : i32
    %c0_i32_1 = arith.constant 0 : i32
    return %1, %c0_i32, %c0_i32_0 : i32, i32, i32
  }
  func.func @transform_1(%arg0: i32, %arg1: i32) -> (i32, i32) {
    %c0_i32 = arith.constant 0 : i32
    %c0_i32_0 = arith.constant 0 : i32
    %c0_i32_1 = arith.constant 0 : i32
    return %c0_i32, %c0_i32_0 : i32, i32
  }
  func.func @transform_2(%arg0: i32, %arg1: i32) -> (i32, i32) {
    %c0_i32 = arith.constant 0 : i32
    %c0_i32_0 = arith.constant 0 : i32
    %c0_i32_1 = arith.constant 0 : i32
    return %c0_i32, %c0_i32_0 : i32, i32
  }
  func.func @transform_3(%arg0: i32, %arg1: i32) -> (i32, i32, i32) {
    %0 = arith.muli %arg1, %arg0 : i32
    %c0_i32 = arith.constant 0 : i32
    %c0_i32_0 = arith.constant 0 : i32
    %c0_i32_1 = arith.constant 0 : i32
    return %0, %c0_i32, %c0_i32_0 : i32, i32, i32
  }
}

module attributes {stable_mosaic.version = 11 : i64} {
  func.func @kernel(%arg0: i32, %arg1: i32, %arg2: memref<2x4x16xf32, #tpu.memory_space<vmem>>, %arg3: memref<8x36xf32, #tpu.memory_space<vmem>>, %arg4: memref<8x2xf32, #tpu.memory_space<vmem>>, %arg5: memref<2x8x8xf32, #tpu.memory_space<vmem>>, %arg6: memref<2x8x8xf32, #tpu.memory_space<vmem>>, %arg7: memref<1x2x8x8xf32, #tpu.memory_space<vmem>>, %arg8: memref<8x2xf32, #tpu.memory_space<vmem>>) attributes {dimension_semantics = [#tpu.dimension_semantics<arbitrary>, #tpu.dimension_semantics<arbitrary>], iteration_bounds = array<i64: 2, 1>, scalar_prefetch = 0 : i64, scratch_operands = 2 : i64, tpu.core_type = #tpu.core_type<tc>, window_params = [{transform_indices = @transform_0, window_bounds = array<i64: 2, 4, 16>}, {pipeline_mode = #tpu.pipeline_mode<synchronous>, transform_indices = @transform_1, window_bounds = array<i64: 8, 36>}, {pipeline_mode = #tpu.pipeline_mode<synchronous>, transform_indices = @transform_2, window_bounds = array<i64: 8, 2>}, {transform_indices = @transform_3, window_bounds = array<i64: 2, 8, 8>}, {transform_indices = @transform_4, window_bounds = array<i64: 2, 8, 8>}]} {
    %c0_i32 = arith.constant 0 : i32
    %0 = arith.cmpi eq, %arg0, %c0_i32 : i32
    %c0_i32_0 = arith.constant 0 : i32
    %1 = arith.cmpi eq, %arg1, %c0_i32_0 : i32
    %2 = arith.andi %0, %1 : i1
    %3 = arith.extui %2 : i1 to i32
    %c0_i32_1 = arith.constant 0 : i32
    %4 = arith.cmpi ne, %3, %c0_i32_1 : i32
    scf.if %4 {
      %cst = arith.constant 0.000000e+00 : f32
      %11 = vector.broadcast %cst : f32 to vector<8x2xf32>
      %c0 = arith.constant 0 : index
      %c0_5 = arith.constant 0 : index
      %12 = vector.load %arg8[%c0, %c0_5] : memref<8x2xf32, #tpu.memory_space<vmem>>, vector<8x2xf32>
      tpu.vector_store %arg8[%c0, %c0_5], %11 {strides = array<i32>} : memref<8x2xf32, #tpu.memory_space<vmem>>, vector<8x2xf32>,
    } else {
    }
    %c0_i32_2 = arith.constant 0 : i32
    %5 = arith.cmpi eq, %arg0, %c0_i32_2 : i32
    %6 = arith.extui %5 : i1 to i32
    %c0_i32_3 = arith.constant 0 : i32
    %7 = arith.cmpi ne, %6, %c0_i32_3 : i32
    scf.if %7 {
      %c0 = arith.constant 0 : index
      %c0_5 = arith.constant 0 : index
      %11 = vector.load %arg3[%c0, %c0_5] : memref<8x36xf32, #tpu.memory_space<vmem>>, vector<8x36xf32>
      %c0_6 = arith.constant 0 : index
      %c0_7 = arith.constant 0 : index
      %c0_8 = arith.constant 0 : index
      %12 = vector.load %arg2[%c0_6, %c0_7, %c0_8] : memref<2x4x16xf32, #tpu.memory_space<vmem>>, vector<1x4x8xf32>
      %13 = vector.shape_cast %12 : vector<1x4x8xf32> to vector<4x8xf32>
      %c0_9 = arith.constant 0 : index
      %c0_10 = arith.constant 0 : index
      %c1 = arith.constant 1 : index
      %14 = vector.load %arg2[%c0_9, %c0_10, %c1] : memref<2x4x16xf32, #tpu.memory_space<vmem>>, vector<1x4x8xf32>
      %15 = vector.shape_cast %14 : vector<1x4x8xf32> to vector<4x8xf32>
      %c0_11 = arith.constant 0 : index
      %c0_12 = arith.constant 0 : index
      %c2 = arith.constant 2 : index
      %16 = vector.load %arg2[%c0_11, %c0_12, %c2] : memref<2x4x16xf32, #tpu.memory_space<vmem>>, vector<1x4x8xf32>
      %17 = vector.shape_cast %16 : vector<1x4x8xf32> to vector<4x8xf32>
      %c0_13 = arith.constant 0 : index
      %c0_14 = arith.constant 0 : index
      %c3 = arith.constant 3 : index
      %18 = vector.load %arg2[%c0_13, %c0_14, %c3] : memref<2x4x16xf32, #tpu.memory_space<vmem>>, vector<1x4x8xf32>
      %19 = vector.shape_cast %18 : vector<1x4x8xf32> to vector<4x8xf32>
      %c0_15 = arith.constant 0 : index
      %c0_16 = arith.constant 0 : index
      %c4 = arith.constant 4 : index
      %20 = vector.load %arg2[%c0_15, %c0_16, %c4] : memref<2x4x16xf32, #tpu.memory_space<vmem>>, vector<1x4x8xf32>
      %21 = vector.shape_cast %20 : vector<1x4x8xf32> to vector<4x8xf32>
      %c0_17 = arith.constant 0 : index
      %c0_18 = arith.constant 0 : index
      %c5 = arith.constant 5 : index
      %22 = vector.load %arg2[%c0_17, %c0_18, %c5] : memref<2x4x16xf32, #tpu.memory_space<vmem>>, vector<1x4x8xf32>
      %23 = vector.shape_cast %22 : vector<1x4x8xf32> to vector<4x8xf32>
      %c0_19 = arith.constant 0 : index
      %c0_20 = arith.constant 0 : index
      %c6 = arith.constant 6 : index
      %24 = vector.load %arg2[%c0_19, %c0_20, %c6] : memref<2x4x16xf32, #tpu.memory_space<vmem>>, vector<1x4x8xf32>
      %25 = vector.shape_cast %24 : vector<1x4x8xf32> to vector<4x8xf32>
      %c0_21 = arith.constant 0 : index
      %c0_22 = arith.constant 0 : index
      %c7 = arith.constant 7 : index
      %26 = vector.load %arg2[%c0_21, %c0_22, %c7] : memref<2x4x16xf32, #tpu.memory_space<vmem>>, vector<1x4x8xf32>
      %27 = vector.shape_cast %26 : vector<1x4x8xf32> to vector<4x8xf32>
      %c0_23 = arith.constant 0 : index
      %c0_24 = arith.constant 0 : index
      %c8 = arith.constant 8 : index
      %28 = vector.load %arg2[%c0_23, %c0_24, %c8] : memref<2x4x16xf32, #tpu.memory_space<vmem>>, vector<1x4x8xf32>
      %29 = vector.shape_cast %28 : vector<1x4x8xf32> to vector<4x8xf32>
      %30 = tpu.concatenate %13, %15, %17, %19, %21, %23, %25, %27, %29 in 0 : vector<4x8xf32>, vector<4x8xf32>, vector<4x8xf32>, vector<4x8xf32>, vector<4x8xf32>, vector<4x8xf32>, vector<4x8xf32>, vector<4x8xf32>, vector<4x8xf32> -> vector<36x8xf32>
      %cst = arith.constant dense<0.000000e+00> : vector<8x8xf32>
      %31 = tpu.matmul %11, %30, %cst {dimension_numbers = #tpu.dot_dimension_numbers<[1], [0], [0], [1], [0, 0, 1, 1], [], []>} : vector<8x36xf32>, vector<36x8xf32>, vector<8x8xf32> -> vector<8x8xf32>
      %c1_25 = arith.constant 1 : index
      %c0_26 = arith.constant 0 : index
      %c0_27 = arith.constant 0 : index
      %32 = vector.load %arg2[%c1_25, %c0_26, %c0_27] : memref<2x4x16xf32, #tpu.memory_space<vmem>>, vector<1x4x8xf32>
      %33 = vector.shape_cast %32 : vector<1x4x8xf32> to vector<4x8xf32>
      %c1_28 = arith.constant 1 : index
      %c0_29 = arith.constant 0 : index
      %c1_30 = arith.constant 1 : index
      %34 = vector.load %arg2[%c1_28, %c0_29, %c1_30] : memref<2x4x16xf32, #tpu.memory_space<vmem>>, vector<1x4x8xf32>
      %35 = vector.shape_cast %34 : vector<1x4x8xf32> to vector<4x8xf32>
      %c1_31 = arith.constant 1 : index
      %c0_32 = arith.constant 0 : index
      %c2_33 = arith.constant 2 : index
      %36 = vector.load %arg2[%c1_31, %c0_32, %c2_33] : memref<2x4x16xf32, #tpu.memory_space<vmem>>, vector<1x4x8xf32>
      %37 = vector.shape_cast %36 : vector<1x4x8xf32> to vector<4x8xf32>
      %c1_34 = arith.constant 1 : index
      %c0_35 = arith.constant 0 : index
      %c3_36 = arith.constant 3 : index
      %38 = vector.load %arg2[%c1_34, %c0_35, %c3_36] : memref<2x4x16xf32, #tpu.memory_space<vmem>>, vector<1x4x8xf32>
      %39 = vector.shape_cast %38 : vector<1x4x8xf32> to vector<4x8xf32>
      %c1_37 = arith.constant 1 : index
      %c0_38 = arith.constant 0 : index
      %c4_39 = arith.constant 4 : index
      %40 = vector.load %arg2[%c1_37, %c0_38, %c4_39] : memref<2x4x16xf32, #tpu.memory_space<vmem>>, vector<1x4x8xf32>
      %41 = vector.shape_cast %40 : vector<1x4x8xf32> to vector<4x8xf32>
      %c1_40 = arith.constant 1 : index
      %c0_41 = arith.constant 0 : index
      %c5_42 = arith.constant 5 : index
      %42 = vector.load %arg2[%c1_40, %c0_41, %c5_42] : memref<2x4x16xf32, #tpu.memory_space<vmem>>, vector<1x4x8xf32>
      %43 = vector.shape_cast %42 : vector<1x4x8xf32> to vector<4x8xf32>
      %c1_43 = arith.constant 1 : index
      %c0_44 = arith.constant 0 : index
      %c6_45 = arith.constant 6 : index
      %44 = vector.load %arg2[%c1_43, %c0_44, %c6_45] : memref<2x4x16xf32, #tpu.memory_space<vmem>>, vector<1x4x8xf32>
      %45 = vector.shape_cast %44 : vector<1x4x8xf32> to vector<4x8xf32>
      %c1_46 = arith.constant 1 : index
      %c0_47 = arith.constant 0 : index
      %c7_48 = arith.constant 7 : index
      %46 = vector.load %arg2[%c1_46, %c0_47, %c7_48] : memref<2x4x16xf32, #tpu.memory_space<vmem>>, vector<1x4x8xf32>
      %47 = vector.shape_cast %46 : vector<1x4x8xf32> to vector<4x8xf32>
      %c1_49 = arith.constant 1 : index
      %c0_50 = arith.constant 0 : index
      %c8_51 = arith.constant 8 : index
      %48 = vector.load %arg2[%c1_49, %c0_50, %c8_51] : memref<2x4x16xf32, #tpu.memory_space<vmem>>, vector<1x4x8xf32>
      %49 = vector.shape_cast %48 : vector<1x4x8xf32> to vector<4x8xf32>
      %50 = tpu.concatenate %33, %35, %37, %39, %41, %43, %45, %47, %49 in 0 : vector<4x8xf32>, vector<4x8xf32>, vector<4x8xf32>, vector<4x8xf32>, vector<4x8xf32>, vector<4x8xf32>, vector<4x8xf32>, vector<4x8xf32>, vector<4x8xf32> -> vector<36x8xf32>
      %cst_52 = arith.constant dense<0.000000e+00> : vector<8x8xf32>
      %51 = tpu.matmul %11, %50, %cst_52 {dimension_numbers = #tpu.dot_dimension_numbers<[1], [0], [0], [1], [0, 0, 1, 1], [], []>} : vector<8x36xf32>, vector<36x8xf32>, vector<8x8xf32> -> vector<8x8xf32>
      %52 = vector.shape_cast %31 : vector<8x8xf32> to vector<1x8x8xf32>
      %53 = vector.shape_cast %51 : vector<8x8xf32> to vector<1x8x8xf32>
      %54 = tpu.concatenate %52, %53 in 0 : vector<1x8x8xf32>, vector<1x8x8xf32> -> vector<2x8x8xf32>
      %cst_53 = arith.constant dense<0.000000e+00> : vector<2x8xf32>
      %55 = vector.multi_reduction <add>, %54, %cst_53 [2] : vector<2x8x8xf32> to vector<2x8xf32>
      %56 = vector.shape_cast %55 : vector<2x8xf32> to vector<2x8x1xf32>
      %cst_54 = arith.constant dense<0.000000e+00> : vector<8x1xf32>
      %57 = vector.multi_reduction <add>, %56, %cst_54 [0] : vector<2x8x1xf32> to vector<8x1xf32>
      %58 = arith.mulf %54, %54 : vector<2x8x8xf32>
      %cst_55 = arith.constant dense<0.000000e+00> : vector<2x8xf32>
      %59 = vector.multi_reduction <add>, %58, %cst_55 [2] : vector<2x8x8xf32> to vector<2x8xf32>
      %60 = vector.shape_cast %59 : vector<2x8xf32> to vector<2x8x1xf32>
      %cst_56 = arith.constant dense<0.000000e+00> : vector<8x1xf32>
      %61 = vector.multi_reduction <add>, %60, %cst_56 [0] : vector<2x8x1xf32> to vector<8x1xf32>
      %c0_57 = arith.constant 0 : index
      %c0_58 = arith.constant 0 : index
      %62 = vector.load %arg8[%c0_57, %c0_58] : memref<8x2xf32, #tpu.memory_space<vmem>>, vector<8x2xf32>
      %63 = tpu.concatenate %57, %61 in 1 : vector<8x1xf32>, vector<8x1xf32> -> vector<8x2xf32>
      %64 = arith.addf %62, %63 : vector<8x2xf32>
      %c0_59 = arith.constant 0 : index
      %c0_60 = arith.constant 0 : index
      %65 = vector.load %arg8[%c0_59, %c0_60] : memref<8x2xf32, #tpu.memory_space<vmem>>, vector<8x2xf32>
      tpu.vector_store %arg8[%c0_59, %c0_60], %64 {strides = array<i32>} : memref<8x2xf32, #tpu.memory_space<vmem>>, vector<8x2xf32>,
      %66 = arith.index_cast %arg1 : i32 to index
      %c0_61 = arith.constant 0 : index
      %c0_62 = arith.constant 0 : index
      %c0_63 = arith.constant 0 : index
      %67 = vector.load %arg7[%66, %c0_61, %c0_62, %c0_63] : memref<1x2x8x8xf32, #tpu.memory_space<vmem>>, vector<1x2x8x8xf32>
      %68 = vector.shape_cast %67 : vector<1x2x8x8xf32> to vector<2x8x8xf32>
      %69 = vector.shape_cast %54 : vector<2x8x8xf32> to vector<1x2x8x8xf32>
      tpu.vector_store %arg7[%66, %c0_61, %c0_62, %c0_63], %69 {strides = array<i32>} : memref<1x2x8x8xf32, #tpu.memory_space<vmem>>, vector<1x2x8x8xf32>,
    } else {
    }
    %c1_i32 = arith.constant 1 : i32
    %8 = arith.cmpi eq, %arg0, %c1_i32 : i32
    %9 = arith.extui %8 : i1 to i32
    %c0_i32_4 = arith.constant 0 : i32
    %10 = arith.cmpi ne, %9, %c0_i32_4 : i32
    scf.if %10 {
      %11 = arith.index_cast %arg1 : i32 to index
      %c0 = arith.constant 0 : index
      %c0_5 = arith.constant 0 : index
      %c0_6 = arith.constant 0 : index
      %12 = vector.load %arg7[%11, %c0, %c0_5, %c0_6] : memref<1x2x8x8xf32, #tpu.memory_space<vmem>>, vector<1x2x8x8xf32>
      %13 = vector.shape_cast %12 : vector<1x2x8x8xf32> to vector<2x8x8xf32>
      %c0_7 = arith.constant 0 : index
      %c0_8 = arith.constant 0 : index
      %14 = vector.load %arg8[%c0_7, %c0_8] : memref<8x2xf32, #tpu.memory_space<vmem>>, vector<8x2xf32>
      %15 = vector.extract_strided_slice %14 {offsets = [0, 0], sizes = [8, 1], strides = [1, 1]} : vector<8x2xf32> to vector<8x1xf32>
      %cst = arith.constant 6.250000e-02 : f32
      %16 = vector.broadcast %cst : f32 to vector<8x1xf32>
      %17 = arith.mulf %15, %16 : vector<8x1xf32>
      %18 = vector.extract_strided_slice %14 {offsets = [0, 1], sizes = [8, 1], strides = [1, 1]} : vector<8x2xf32> to vector<8x1xf32>
      %cst_9 = arith.constant 6.250000e-02 : f32
      %19 = vector.broadcast %cst_9 : f32 to vector<8x1xf32>
      %20 = arith.mulf %18, %19 : vector<8x1xf32>
      %21 = arith.mulf %17, %17 : vector<8x1xf32>
      %22 = arith.subf %20, %21 : vector<8x1xf32>
      %c0_10 = arith.constant 0 : index
      %c0_11 = arith.constant 0 : index
      %23 = vector.load %arg4[%c0_10, %c0_11] : memref<8x2xf32, #tpu.memory_space<vmem>>, vector<8x1xf32>
      %cst_12 = arith.constant 1.000000e-03 : f32
      %24 = vector.broadcast %cst_12 : f32 to vector<8x1xf32>
      %25 = arith.addf %22, %24 : vector<8x1xf32>
      %26 = math.rsqrt %25 : vector<8x1xf32>
      %27 = arith.mulf %23, %26 : vector<8x1xf32>
      %c0_13 = arith.constant 0 : index
      %c1 = arith.constant 1 : index
      %28 = vector.load %arg4[%c0_13, %c1] : memref<8x2xf32, #tpu.memory_space<vmem>>, vector<8x1xf32>
      %29 = arith.mulf %17, %27 : vector<8x1xf32>
      %30 = arith.subf %28, %29 : vector<8x1xf32>
      %31 = vector.shape_cast %27 : vector<8x1xf32> to vector<1x8x1xf32>
      %32 = vector.broadcast %31 : vector<1x8x1xf32> to vector<2x8x8xf32>
      %33 = arith.mulf %13, %32 : vector<2x8x8xf32>
      %34 = vector.shape_cast %30 : vector<8x1xf32> to vector<1x8x1xf32>
      %35 = vector.broadcast %34 : vector<1x8x1xf32> to vector<2x8x8xf32>
      %36 = arith.addf %33, %35 : vector<2x8x8xf32>
      %c0_14 = arith.constant 0 : index
      %c0_15 = arith.constant 0 : index
      %c0_16 = arith.constant 0 : index
      %37 = vector.load %arg5[%c0_14, %c0_15, %c0_16] : memref<2x8x8xf32, #tpu.memory_space<vmem>>, vector<2x8x8xf32>
      %38 = arith.addf %36, %37 : vector<2x8x8xf32>
      %cst_17 = arith.constant 0.000000e+00 : f32
      %39 = vector.broadcast %cst_17 : f32 to vector<2x8x8xf32>
      %40 = arith.maximumf %38, %39 : vector<2x8x8xf32>
      %c0_18 = arith.constant 0 : index
      %c0_19 = arith.constant 0 : index
      %c0_20 = arith.constant 0 : index
      %41 = vector.load %arg6[%c0_18, %c0_19, %c0_20] : memref<2x8x8xf32, #tpu.memory_space<vmem>>, vector<2x8x8xf32>
      tpu.vector_store %arg6[%c0_18, %c0_19, %c0_20], %40 {strides = array<i32>} : memref<2x8x8xf32, #tpu.memory_space<vmem>>, vector<2x8x8xf32>,
    } else {
    }
    return
  }
  func.func @transform_0(%arg0: i32, %arg1: i32) -> (i32, i32, i32) {
    %c1_i32 = arith.constant 1 : i32
    %0 = arith.subi %c1_i32, %arg0 : i32
    %1 = arith.muli %0, %arg1 : i32
    %c0_i32 = arith.constant 0 : i32
    %c0_i32_0 = arith.constant 0 : i32
    %c0_i32_1 = arith.constant 0 : i32
    return %1, %c0_i32, %c0_i32_0 : i32, i32, i32
  }
  func.func @transform_1(%arg0: i32, %arg1: i32) -> (i32, i32) {
    %c0_i32 = arith.constant 0 : i32
    %c0_i32_0 = arith.constant 0 : i32
    %c0_i32_1 = arith.constant 0 : i32
    return %c0_i32, %c0_i32_0 : i32, i32
  }
  func.func @transform_2(%arg0: i32, %arg1: i32) -> (i32, i32) {
    %c0_i32 = arith.constant 0 : i32
    %c0_i32_0 = arith.constant 0 : i32
    %c0_i32_1 = arith.constant 0 : i32
    return %c0_i32, %c0_i32_0 : i32, i32
  }
  func.func @transform_3(%arg0: i32, %arg1: i32) -> (i32, i32, i32) {
    %0 = arith.muli %arg1, %arg0 : i32
    %c0_i32 = arith.constant 0 : i32
    %c0_i32_0 = arith.constant 0 : i32
    %c0_i32_1 = arith.constant 0 : i32
    return %0, %c0_i32, %c0_i32_0 : i32, i32, i32
  }
  func.func @transform_4(%arg0: i32, %arg1: i32) -> (i32, i32, i32) {
    %0 = arith.muli %arg1, %arg0 : i32
    %c0_i32 = arith.constant 0 : i32
    %c0_i32_0 = arith.constant 0 : i32
    %c0_i32_1 = arith.constant 0 : i32
    return %0, %c0_i32, %c0_i32_0 : i32, i32, i32
  }
}

</mosaic_0001>

<bundles_post_ra>
// kernel: iblock_forward.5
= control target key start
LH: loop header
LB: loop body
LE: loop exit
PB: predicated region body
PF: predicated region fallthrough
CT: control target
= control target key end

     0   :  { %s754_s12 = smov 0   ;;  %s756_s13 = smov 0   ;;  %s846_s0 = inlined_call_operand.vmem [shape: f32[2,4,16], index: 0, kind: input, shape index: {}]   ;;  %s847_s1 = inlined_call_operand.vmem [shape: f32[4,36], index: 1, kind: input, shape index: {}]   ;;  %s848_s2 = inlined_call_operand.vmem [shape: f32[4,2], index: 2, kind: input, shape index: {}]   ;;  %s849_s3 = inlined_call_operand.vmem [shape: f32[2,4,16], index: 3, kind: output, shape index: {}]  }
   0x1   :  { %s758_s14 = smov 0  }
   0x2 LB: > { %s25_s15 = sadd.s32 1, %s712_s13  ;;  %p598_p0 = scmp.ge.s32.totalorder %s716_s14, 1  ;;  %s716_s14 = sphi %s758_s14, %s13_s14   ;;  %s712_s13 = sphi %s756_s13, %s851_s13   ;;  %s708_s12 = sphi %s754_s12, %s850_s12  }
   0x3   : > { %p27_p1 = scmp.ge.s32.totalorder %s25_s15, 2  ;;  %p160_p2 = scmp.lt.s32.totalorder %s716_s14, 3 }
   0x5   : > { %s853_s15 = smov (%p27_p1, %s25_s15), 0  ;;  %p161_p3 = pnand %p598_p0, %p160_p2 }
   0x6   : > { %p205_p4 = scmp.eq.s32.totalorder (!%p161_p3), %s708_s12, 0 }
   0x7   : > { %164 = sbr.rel (%p161_p3) target bundleno = 1148 (0x47c), region = 32 }
   0xc   : > { %210 = sbr.rel (!%p205_p4) target bundleno = 17 (0x11), region = 36  ;;  %vm211_vm0 = vcmask (%p205_p4), 11264   ;;  %v718_v0 = vmov (%p205_p4), 0.0  }
   0xd   : > { %212 = vst.msk [vmem:[#allocation3] sm:$0xf] (%p205_p4), %vm211_vm0, %v718_v0 }
  0x11 PF: > { %p600_p5 = scmp.ne.s32.totalorder %s708_s12, 0 }
  0x12   : > { %s719_s18 = smov (!%p600_p5), 122   ;;  %s720_s19 = smov (!%p600_p5), 120  }
  0x13   : > { %215 = sbr.rel (%p600_p5) target bundleno = 517 (0x205), region = 40  ;;  %s722_s22 = smov (!%p600_p5), 121  }
  0x14   : > { %s723_s23 = smov (!%p600_p5), 124   ;;  %s724_s24 = smov (!%p600_p5), 123  }
  0x15   : > { %s726_s25 = smov (!%p600_p5), 126   ;;  %s727_s26 = smov (!%p600_p5), 125  }
  0x16   : > { %s728_s27 = smov (!%p600_p5), 127  }
  0x18   : > { %v779_v1 = vld [vmem:[%s846_s0] sm:$0xf]  ;;  %v787_v3 = vld [vmem:[%s846_s0 + $0x4] sm:$0xf]  ;;  %v721_v4 = vmov 0.0   ;;  %vm725_vm1 = vmmov 0  }
  0x19   : > { %235 = vrot.lane.b32.xlu1 %v779_v1, %s719_s18  ;;  %241 = vrot.lane.b32.xlu0 %v779_v1, %s720_s19  ;;  %v219_v2 = vrot.slane %v779_v1, 4  ;;  %v327_v5 = vrot.slane %v787_v3, 4  ;;  %vm243_vm2 = vcmask 1043456   ;;  %v216_v28 = vld [vmem:[%s847_s1] sm:$0xf]  ;;  %vm248_vm3 = vcmask 293888  }
  0x1a   : > { %624 = vmatprep.subr.mxu0 %v721_v4  ;;  %637 = vmatprep.subr.mxu1 %v721_v4  ;;  %vm427_vm4 = vcmask 60416   ;;  %vm449_vm5 = vcmask 7168   ;;  %v448_v50 = vld [vmem:[#allocation3] sm:$0xf]  ;;  %vm452_vm6 = vcmask 11264  }
  0x1b   : > { %634 = vmatprep.mubr.msk.f32.mxu0 %vm725_vm1, %v721_v4  ;;  %647 = vmatprep.mubr.msk.f32.mxu1 %vm725_vm1, %v721_v4 }
  0x1d   : > { %349 = vrot.lane.b32.xlu0 %v787_v3, %s720_s19  ;;  %238 = vrot.lane.b32.xlu1 %v219_v2, %s722_s22 }
  0x21   : > { %343 = vrot.lane.b32.xlu0 %v787_v3, %s719_s18  ;;  %346 = vrot.lane.b32.xlu1 %v327_v5, %s722_s22 }
  0x25   : > { %229 = vrot.lane.b32.xlu0 %v779_v1, %s723_s23  ;;  %232 = vrot.lane.b32.xlu1 %v219_v2, %s724_s24 }
  0x29   : > { %337 = vrot.lane.b32.xlu0 %v787_v3, %s723_s23  ;;  %340 = vrot.lane.b32.xlu1 %v327_v5, %s724_s24 }
  0x2d   : > { %223 = vrot.lane.b32.xlu0 %v779_v1, %s726_s25  ;;  %226 = vrot.lane.b32.xlu1 %v219_v2, %s727_s26 }
  0x31   : > { %331 = vrot.lane.b32.xlu0 %v787_v3, %s726_s25  ;;  %334 = vrot.lane.b32.xlu1 %v327_v5, %s727_s26 }
  0x35   : > { %220 = vrot.lane.b32.xlu0 %v219_v2, %s728_s27  ;;  %328 = vrot.lane.b32.xlu1 %v327_v5, %s728_s27 }
  0x8b   : > { %v236_v6 = vpop.permute.xlu1 %235  ;;  %v242_v7 = vpop.permute.xlu0 %241 }
  0x8c   : > { %625 = vmatpush3.msk.msra.mxu0 %vm243_vm2, %v242_v7 }
  0x8d   : > { %626 = vmatprep.subr.mxu0 %v721_v4 }
  0x8f   : > { %v350_v8 = vpop.permute.xlu0 %349  ;;  %v239_v9 = vpop.permute.xlu1 %238 }
  0x90   : > { %638 = vmatpush3.msk.msra.mxu1 %vm243_vm2, %v350_v8  ;;  %v247_v10 = vsel %vm243_vm2, %v236_v6, %v239_v9 }
  0x91   : > { %627 = vmatpush3.msra.mxu0 %v247_v10  ;;  %639 = vmatprep.subr.mxu1 %v721_v4 }
  0x92   : > { %628 = vmatprep.subr.mxu0 %v721_v4 }
  0x93   : > { %v344_v11 = vpop.permute.xlu0 %343  ;;  %v347_v12 = vpop.permute.xlu1 %346 }
  0x94   : > { %v354_v13 = vsel %vm243_vm2, %v344_v11, %v347_v12 }
  0x95   : > { %640 = vmatpush3.msra.mxu1 %v354_v13 }
  0x96   : > { %641 = vmatprep.subr.mxu1 %v721_v4 }
  0x97   : > { %v230_v14 = vpop.permute.xlu0 %229  ;;  %v233_v15 = vpop.permute.xlu1 %232 }
  0x98   : > { %v246_v16 = vsel %vm243_vm2, %v230_v14, %v233_v15 }
  0x99   : > { %629 = vmatpush3.msra.mxu0 %v246_v16 }
  0x9a   : > { %630 = vmatprep.subr.mxu0 %v721_v4 }
  0x9b   : > { %v338_v17 = vpop.permute.xlu0 %337  ;;  %v341_v18 = vpop.permute.xlu1 %340 }
  0x9c   : > { %v353_v19 = vsel %vm243_vm2, %v338_v17, %v341_v18 }
  0x9d   : > { %642 = vmatpush3.msra.mxu1 %v353_v19 }
  0x9e   : > { %643 = vmatprep.subr.mxu1 %v721_v4 }
  0x9f   : > { %v224_v20 = vpop.permute.xlu0 %223  ;;  %v227_v21 = vpop.permute.xlu1 %226 }
  0xa0   : > { %v245_v22 = vsel %vm243_vm2, %v224_v20, %v227_v21 }
  0xa1   : > { %631 = vmatpush3.msra.mxu0 %v245_v22 }
  0xa2   : > { %632 = vmatprep.subr.mxu0 %v721_v4 }
  0xa3   : > { %v332_v23 = vpop.permute.xlu0 %331  ;;  %v335_v24 = vpop.permute.xlu1 %334 }
  0xa4   : > { %v352_v25 = vsel %vm243_vm2, %v332_v23, %v335_v24 }
  0xa5   : > { %644 = vmatpush3.msra.mxu1 %v352_v25 }
  0xa6   : > { %645 = vmatprep.subr.mxu1 %v721_v4 }
  0xa7   : > { %v221_v26 = vpop.permute.xlu0 %220  ;;  %v329_v27 = vpop.permute.xlu1 %328 }
  0xa8   : > { %v244_v29 = vsel %vm243_vm2, %v779_v1, %v221_v26  ;;  %v351_v30 = vsel %vm243_vm2, %v787_v3, %v329_v27 }
  0xa9   : > { %633 = vmatpush3.msra.mxu0 %v244_v29  ;;  %646 = vmatpush3.msra.mxu1 %v351_v30 }
  0xaa   : > { %635 = vmatmul.mubr.msk.f32.vlgmr.msra.gmra.mxu0 %vm248_vm3, %v216_v28  ;;  %648 = vmatmul.mubr.msk.f32.vlgmr.msra.gmra.mxu1 %vm248_vm3, %v216_v28 }
 0x16a   : > { %v320_v31 = vpop.f32.mrf.mxu0  ;;  %v423_v32 = vpop.f32.mrf.mxu1 }
 0x16b   : > { %456 = vst.msk [vmem:[#allocation2] sm:$0xf] %vm427_vm4, %v320_v31  ;;  %457 = vst.msk [vmem:[#allocation2 + $0x4] sm:$0xf] %vm427_vm4, %v423_v32  ;;  %v431_v33 = vsel %vm427_vm4, %v423_v32, 0.0  ;;  %v428_v34 = vsel %vm427_vm4, %v320_v31, 0.0  ;;  %v437_v35 = vmul.f32 %v320_v31, %v320_v31  ;;  %v438_v38 = vmul.f32 %v423_v32, %v423_v32 }
 0x16c   : > { %432 = vadd.xlane.f32.xlu1 %v431_v33  ;;  %429 = vadd.xlane.f32.xlu0 %v428_v34  ;;  %v636_v36 = vpop.f32.mrf.mxu0  ;;  %v649_v37 = vpop.f32.mrf.mxu1 }
 0x16d   : > { %v439_v39 = vsel %vm427_vm4, %v437_v35, 0.0  ;;  %v442_v40 = vsel %vm427_vm4, %v438_v38, 0.0 }
 0x170   : > { %440 = vadd.xlane.f32.xlu0 %v439_v39 }
 0x174   : > { %443 = vadd.xlane.f32.xlu0 %v442_v40 }
 0x1f5   : > { %v430_v41 = vpop.xlane.xlu0 %429  ;;  %v433_v42 = vpop.xlane.xlu1 %432 }
 0x1f6   : > { %v435_v44 = vsel %vm243_vm2, %v433_v42, 0.0  ;;  %v434_v45 = vsel %vm243_vm2, %v430_v41, 0.0 }
 0x1f7   : > { %v436_v49 = vadd.f32 %v435_v44, %v434_v45 }
 0x1f9   : > { %v441_v43 = vpop.xlane.xlu0 %440 }
 0x1fa   : > { %v445_v47 = vsel %vm243_vm2, %v441_v43, 0.0 }
 0x1fd   : > { %v444_v46 = vpop.xlane.xlu0 %443 }
 0x1fe   : > { %v446_v48 = vsel %vm243_vm2, %v444_v46, 0.0 }
 0x1ff   : > { %v447_v51 = vadd.f32 %v446_v48, %v445_v47 }
 0x201   : > { %v450_v52 = vsel %vm449_vm5, %v436_v49, %v447_v51 }
 0x202   : > { %v451_v53 = vadd.f32 %v450_v52, %v448_v50 }
 0x204   : > { %453 = vst.msk [vmem:[#allocation3] sm:$0xf] %vm452_vm6, %v451_v53 }
 0x205 PF: > { %p606_p6 = scmp.ne.s32.totalorder %s708_s12, 1 }
 0x206   : > { %s729_s30 = smov (!%p606_p6), 1   ;;  %s731_s4 = smov (!%p606_p6), 127  }
 0x207   : > { %461 = sbr.rel (%p606_p6) target bundleno = 1148 (0x47c), region = 44  ;;  %s733_s7 = smov (!%p606_p6), 4  }
 0x20c   : > { %v466_v54 = vld [vmem:[#allocation3] sm:$0xf]  ;;  %v730_v60 = vmov 0   ;;  %v732_v62 = vmov 1   ;;  %v474_v63 = vld [vmem:[%s848_s2] sm:$0xf] }
 0x20d   : > { %v467_v55 = vmul.f32 0.0625, %v466_v54  ;;  %690 = vset.pattern.permute.xlu1 %v730_v60  ;;  %691 = vset.pattern.permute.xlu0 %v732_v62  ;;  %v464_v6 = vld [vmem:[#allocation2] sm:$0xf]  ;;  %v465_v7 = vld [vmem:[#allocation2 + $0x4] sm:$0xf]  ;;  %vm512_vm7 = vcmask 31744  }
 0x20e   : > { %vm515_vm8 = vcmask 97280   ;;  %vm518_vm9 = vcmask 125952  }
 0x20f   : > { %v468_v56 = vmul.f32 %v467_v55, %v467_v55 }
 0x211   : > { %470 = vrot.lane.b32.xlu0 %v468_v56, %s729_s30 }
 0x283   : > { %v471_v57 = vpop.permute.xlu0 %470 }
 0x284   : > { %v473_v58 = vsub.f32 %v467_v55, %v471_v57 }
 0x286   : > { %v475_v59 = vadd.f32 0.001, %v473_v58 }
 0x288   : > { %692 = vrsqrt.f32 %v475_v59 }
 0x295   : > { %v693_v61 = vpop.eup %692 }
 0x296   : > { %478 = vrot.lane.b32.xlu0 %v693_v61, %s731_s4 }
 0x308   : > { %v479_v0 = vpop.permute.xlu0 %478 }
 0x309   : > { %v481_v1 = vmul.f32 %v479_v0, %v474_v63 }
 0x30b   : > { %v482_v2 = vmul.f32 %v481_v1, %v467_v55 }
 0x30d   : > { %484 = vrot.lane.b32.xlu1 %v482_v2, %s729_s30 }
 0x311   : > { %490 = vperm.xlu1 %690, %v481_v1  }
 0x37f   : > { %v485_v3 = vpop.permute.xlu1 %484 }
 0x380   : > { %v487_v4 = vsub.f32 %v474_v63, %v485_v3 }
 0x382   : > { %497 = vperm.xlu0 %691, %v487_v4  }
 0x38c   : > { %v491_v5 = vpop.permute.xlu1 %490 }
 0x38d   : > { %v493_v8 = vmul.f32 %v491_v5, %v464_v6  ;;  %v494_v10 = vmul.f32 %v491_v5, %v465_v7 }
 0x3fd   : > { %v498_v9 = vpop.permute.xlu0 %497 }
 0x3fe   : > { %v500_v11 = vadd.f32 %v498_v9, %v493_v8  ;;  %v501_v12 = vadd.f32 %v498_v9, %v494_v10 }
 0x400   : > { %v502_v13 = vmax.f32 %v500_v11, 0.0  ;;  %v503_v14 = vmax.f32 %v501_v12, 0.0 }
 0x402   : > { %506 = vrot.lane.b32.xlu1 %v502_v13, %s733_s7 }
 0x406   : > { %508 = vrot.lane.b32.xlu1 %v503_v14, %s733_s7 }
 0x474   : > { %v507_v15 = vpop.permute.xlu1 %506 }
 0x475   : > { %v513_v16 = vsel %vm512_vm7, 0.0, %v507_v15 }
 0x476   : > { %v516_v17 = vsel %vm515_vm8, %v513_v16, 0.0 }
 0x477   : > { %519 = vst.msk [vmem:[%s849_s3] sm:$0xf] %vm518_vm9, %v516_v17 }
 0x478   : > { %v509_v18 = vpop.permute.xlu1 %508 }
 0x479   : > { %v514_v19 = vsel %vm512_vm7, 0.0, %v509_v18 }
 0x47a   : > { %v517_v20 = vsel %vm515_vm8, %v514_v19, 0.0 }
 0x47b   : > { %520 = vst.msk [vmem:[%s849_s3 + $0x4] sm:$0xf] %vm518_vm9, %v517_v20 }
 0x47c PF: > { %s13_s14 = sadd.s32 1, %s716_s14   ;;  %s850_s12 = smov %s712_s13 }
 0x47d   : > { %p10_p7 = scmp.ge.s32.totalorder %s13_s14, 4   ;;  %s851_s13 = smov %s853_s15 }
 0x47f   :  { %12 = sbr.rel (!%p10_p7) target bundleno = 2 (0x2), region = 77 }

// kernel: iblock_forward.4
= control target key start
LH: loop header
LB: loop body
LE: loop exit
PB: predicated region body
PF: predicated region fallthrough
CT: control target
= control target key end

     0   :  { %s732_s12 = smov 0   ;;  %s734_s13 = smov 0   ;;  %s820_s0 = inlined_call_operand.vmem [shape: f32[2,4,16], index: 0, kind: input, shape index: {}]   ;;  %s821_s1 = inlined_call_operand.vmem [shape: f32[8,36], index: 1, kind: input, shape index: {}]   ;;  %s822_s2 = inlined_call_operand.vmem [shape: f32[8,2], index: 2, kind: input, shape index: {}]   ;;  %s823_s3 = inlined_call_operand.vmem [shape: f32[2,8,8], index: 3, kind: output, shape index: {}]  }
   0x1   :  { %s736_s14 = smov 0  }
   0x2 LB: > { %s25_s15 = sadd.s32 1, %s691_s13  ;;  %p578_p0 = scmp.ge.s32.totalorder %s695_s14, 1  ;;  %s695_s14 = sphi %s736_s14, %s13_s14   ;;  %s691_s13 = sphi %s734_s13, %s825_s13   ;;  %s687_s12 = sphi %s732_s12, %s824_s12  }
   0x3   : > { %p27_p1 = scmp.ge.s32.totalorder %s25_s15, 2  ;;  %p160_p2 = scmp.lt.s32.totalorder %s695_s14, 3 }
   0x5   : > { %s827_s15 = smov (%p27_p1, %s25_s15), 0  ;;  %p161_p3 = pnand %p578_p0, %p160_p2 }
   0x6   : > { %p205_p4 = scmp.eq.s32.totalorder (!%p161_p3), %s687_s12, 0 }
   0x7   : > { %164 = sbr.rel (%p161_p3) target bundleno = 1024 (0x400), region = 32 }
   0xc   : > { %210 = sbr.rel (!%p205_p4) target bundleno = 17 (0x11), region = 36  ;;  %vm211_vm0 = vcmask (%p205_p4), 15360   ;;  %v697_v0 = vmov (%p205_p4), 0.0  }
   0xd   : > { %212 = vst.msk [vmem:[#allocation3] sm:$0xff] (%p205_p4), %vm211_vm0, %v697_v0 }
  0x11 PF: > { %p580_p5 = scmp.ne.s32.totalorder %s687_s12, 0 }
  0x12   : > { %s698_s18 = smov (!%p580_p5), 122   ;;  %s699_s19 = smov (!%p580_p5), 120  }
  0x13   : > { %215 = sbr.rel (%p580_p5) target bundleno = 516 (0x204), region = 40  ;;  %s701_s22 = smov (!%p580_p5), 121  }
  0x14   : > { %s702_s23 = smov (!%p580_p5), 124   ;;  %s703_s24 = smov (!%p580_p5), 123  }
  0x15   : > { %s705_s25 = smov (!%p580_p5), 126   ;;  %s706_s26 = smov (!%p580_p5), 125  }
  0x16   : > { %s707_s27 = smov (!%p580_p5), 127  }
  0x18   : > { %v757_v1 = vld [vmem:[%s820_s0] sm:$0xf]  ;;  %v765_v3 = vld [vmem:[%s820_s0 + $0x4] sm:$0xf]  ;;  %v700_v4 = vmov 0.0   ;;  %vm704_vm1 = vmmov 0  }
  0x19   : > { %235 = vrot.lane.b32.xlu1 %v757_v1, %s698_s18  ;;  %241 = vrot.lane.b32.xlu0 %v757_v1, %s699_s19  ;;  %v219_v2 = vrot.slane %v757_v1, 4  ;;  %v327_v5 = vrot.slane %v765_v3, 4  ;;  %vm243_vm2 = vcmask 1043456   ;;  %v216_v28 = vld [vmem:[%s821_s1] sm:$0xff]  ;;  %vm248_vm3 = vcmask 293888   ;;  %v444_v46 = vld [vmem:[#allocation3] sm:$0xff] }
  0x1a   : > { %604 = vmatprep.subr.mxu0 %v700_v4  ;;  %617 = vmatprep.subr.mxu1 %v700_v4  ;;  %vm427_vm4 = vcmask 64512   ;;  %vm445_vm5 = vcmask 7168   ;;  %vm448_vm6 = vcmask 15360  }
  0x1b   : > { %614 = vmatprep.mubr.msk.f32.mxu0 %vm704_vm1, %v700_v4  ;;  %627 = vmatprep.mubr.msk.f32.mxu1 %vm704_vm1, %v700_v4 }
  0x1d   : > { %349 = vrot.lane.b32.xlu0 %v765_v3, %s699_s19  ;;  %238 = vrot.lane.b32.xlu1 %v219_v2, %s701_s22 }
  0x21   : > { %343 = vrot.lane.b32.xlu0 %v765_v3, %s698_s18  ;;  %346 = vrot.lane.b32.xlu1 %v327_v5, %s701_s22 }
  0x25   : > { %229 = vrot.lane.b32.xlu0 %v757_v1, %s702_s23  ;;  %232 = vrot.lane.b32.xlu1 %v219_v2, %s703_s24 }
  0x29   : > { %337 = vrot.lane.b32.xlu0 %v765_v3, %s702_s23  ;;  %340 = vrot.lane.b32.xlu1 %v327_v5, %s703_s24 }
  0x2d   : > { %223 = vrot.lane.b32.xlu0 %v757_v1, %s705_s25  ;;  %226 = vrot.lane.b32.xlu1 %v219_v2, %s706_s26 }
  0x31   : > { %331 = vrot.lane.b32.xlu0 %v765_v3, %s705_s25  ;;  %334 = vrot.lane.b32.xlu1 %v327_v5, %s706_s26 }
  0x35   : > { %220 = vrot.lane.b32.xlu0 %v219_v2, %s707_s27  ;;  %328 = vrot.lane.b32.xlu1 %v327_v5, %s707_s27 }
  0x8b   : > { %v236_v6 = vpop.permute.xlu1 %235  ;;  %v242_v7 = vpop.permute.xlu0 %241 }
  0x8c   : > { %605 = vmatpush3.msk.msra.mxu0 %vm243_vm2, %v242_v7 }
  0x8d   : > { %606 = vmatprep.subr.mxu0 %v700_v4 }
  0x8f   : > { %v350_v8 = vpop.permute.xlu0 %349  ;;  %v239_v9 = vpop.permute.xlu1 %238 }
  0x90   : > { %618 = vmatpush3.msk.msra.mxu1 %vm243_vm2, %v350_v8  ;;  %v247_v10 = vsel %vm243_vm2, %v236_v6, %v239_v9 }
  0x91   : > { %607 = vmatpush3.msra.mxu0 %v247_v10  ;;  %619 = vmatprep.subr.mxu1 %v700_v4 }
  0x92   : > { %608 = vmatprep.subr.mxu0 %v700_v4 }
  0x93   : > { %v344_v11 = vpop.permute.xlu0 %343  ;;  %v347_v12 = vpop.permute.xlu1 %346 }
  0x94   : > { %v354_v13 = vsel %vm243_vm2, %v344_v11, %v347_v12 }
  0x95   : > { %620 = vmatpush3.msra.mxu1 %v354_v13 }
  0x96   : > { %621 = vmatprep.subr.mxu1 %v700_v4 }
  0x97   : > { %v230_v14 = vpop.permute.xlu0 %229  ;;  %v233_v15 = vpop.permute.xlu1 %232 }
  0x98   : > { %v246_v16 = vsel %vm243_vm2, %v230_v14, %v233_v15 }
  0x99   : > { %609 = vmatpush3.msra.mxu0 %v246_v16 }
  0x9a   : > { %610 = vmatprep.subr.mxu0 %v700_v4 }
  0x9b   : > { %v338_v17 = vpop.permute.xlu0 %337  ;;  %v341_v18 = vpop.permute.xlu1 %340 }
  0x9c   : > { %v353_v19 = vsel %vm243_vm2, %v338_v17, %v341_v18 }
  0x9d   : > { %622 = vmatpush3.msra.mxu1 %v353_v19 }
  0x9e   : > { %623 = vmatprep.subr.mxu1 %v700_v4 }
  0x9f   : > { %v224_v20 = vpop.permute.xlu0 %223  ;;  %v227_v21 = vpop.permute.xlu1 %226 }
  0xa0   : > { %v245_v22 = vsel %vm243_vm2, %v224_v20, %v227_v21 }
  0xa1   : > { %611 = vmatpush3.msra.mxu0 %v245_v22 }
  0xa2   : > { %612 = vmatprep.subr.mxu0 %v700_v4 }
  0xa3   : > { %v332_v23 = vpop.permute.xlu0 %331  ;;  %v335_v24 = vpop.permute.xlu1 %334 }
  0xa4   : > { %v352_v25 = vsel %vm243_vm2, %v332_v23, %v335_v24 }
  0xa5   : > { %624 = vmatpush3.msra.mxu1 %v352_v25 }
  0xa6   : > { %625 = vmatprep.subr.mxu1 %v700_v4 }
  0xa7   : > { %v221_v26 = vpop.permute.xlu0 %220  ;;  %v329_v27 = vpop.permute.xlu1 %328 }
  0xa8   : > { %v244_v29 = vsel %vm243_vm2, %v757_v1, %v221_v26  ;;  %v351_v30 = vsel %vm243_vm2, %v765_v3, %v329_v27 }
  0xa9   : > { %613 = vmatpush3.msra.mxu0 %v244_v29  ;;  %626 = vmatpush3.msra.mxu1 %v351_v30 }
  0xaa   : > { %615 = vmatmul.mubr.msk.f32.vlgmr.msra.gmra.mxu0 %vm248_vm3, %v216_v28  ;;  %628 = vmatmul.mubr.msk.f32.vlgmr.msra.gmra.mxu1 %vm248_vm3, %v216_v28 }
 0x16a   : > { %v320_v31 = vpop.f32.mrf.mxu0  ;;  %v423_v32 = vpop.f32.mrf.mxu1 }
 0x16b   : > { %452 = vst.msk [vmem:[#allocation2] sm:$0xff] %vm427_vm4, %v320_v31  ;;  %453 = vst.msk [vmem:[#allocation2 + $0x8] sm:$0xff] %vm427_vm4, %v423_v32  ;;  %v431_v33 = vsel %vm427_vm4, %v423_v32, 0.0  ;;  %v428_v34 = vsel %vm427_vm4, %v320_v31, 0.0  ;;  %v435_v35 = vmul.f32 %v320_v31, %v320_v31  ;;  %v436_v38 = vmul.f32 %v423_v32, %v423_v32 }
 0x16c   : > { %432 = vadd.xlane.f32.xlu1 %v431_v33  ;;  %429 = vadd.xlane.f32.xlu0 %v428_v34  ;;  %v616_v36 = vpop.f32.mrf.mxu0  ;;  %v629_v37 = vpop.f32.mrf.mxu1 }
 0x16d   : > { %v437_v39 = vsel %vm427_vm4, %v435_v35, 0.0  ;;  %v440_v40 = vsel %vm427_vm4, %v436_v38, 0.0 }
 0x170   : > { %438 = vadd.xlane.f32.xlu0 %v437_v39 }
 0x174   : > { %441 = vadd.xlane.f32.xlu0 %v440_v40 }
 0x1f5   : > { %v430_v41 = vpop.xlane.xlu0 %429  ;;  %v433_v43 = vpop.xlane.xlu1 %432 }
 0x1f6   : > { %v434_v45 = vadd.f32 %v433_v43, %v430_v41 }
 0x1f9   : > { %v439_v42 = vpop.xlane.xlu0 %438 }
 0x1fd   : > { %v442_v44 = vpop.xlane.xlu0 %441 }
 0x1fe   : > { %v443_v47 = vadd.f32 %v442_v44, %v439_v42 }
 0x200   : > { %v446_v48 = vsel %vm445_vm5, %v434_v45, %v443_v47 }
 0x201   : > { %v447_v49 = vadd.f32 %v446_v48, %v444_v46 }
 0x203   : > { %449 = vst.msk [vmem:[#allocation3] sm:$0xff] %vm448_vm6, %v447_v49 }
 0x204 PF: > { %p586_p6 = scmp.ne.s32.totalorder %s687_s12, 1 }
 0x205   : > { %s708_s30 = smov (!%p586_p6), 1   ;;  %s710_s4 = smov (!%p586_p6), 127  }
 0x206   : > { %457 = sbr.rel (%p586_p6) target bundleno = 1024 (0x400), region = 44 }
 0x20b   : > { %v462_v50 = vld [vmem:[#allocation3] sm:$0xff]  ;;  %v709_v56 = vmov 0   ;;  %v711_v58 = vmov 1   ;;  %v470_v59 = vld [vmem:[%s822_s2] sm:$0xff]  ;;  %v461_v3 = vld [vmem:[#allocation2 + $0x8] sm:$0xff]  ;;  %vm498_vm7 = vcmask 64512  }
 0x20c   : > { %v463_v51 = vmul.f32 0.0625, %v462_v50  ;;  %669 = vset.pattern.permute.xlu1 %v709_v56  ;;  %670 = vset.pattern.permute.xlu0 %v711_v58  ;;  %v460_v2 = vld [vmem:[#allocation2] sm:$0xff] }
 0x20e   : > { %v464_v52 = vmul.f32 %v463_v51, %v463_v51 }
 0x210   : > { %466 = vrot.lane.b32.xlu0 %v464_v52, %s708_s30 }
 0x282   : > { %v467_v53 = vpop.permute.xlu0 %466 }
 0x283   : > { %v469_v54 = vsub.f32 %v463_v51, %v467_v53 }
 0x285   : > { %v471_v55 = vadd.f32 0.001, %v469_v54 }
 0x287   : > { %671 = vrsqrt.f32 %v471_v55 }
 0x294   : > { %v672_v57 = vpop.eup %671 }
 0x295   : > { %474 = vrot.lane.b32.xlu0 %v672_v57, %s710_s4 }
 0x307   : > { %v475_v60 = vpop.permute.xlu0 %474 }
 0x308   : > { %v477_v61 = vmul.f32 %v475_v60, %v470_v59 }
 0x30a   : > { %v478_v62 = vmul.f32 %v477_v61, %v463_v51 }
 0x30c   : > { %480 = vrot.lane.b32.xlu1 %v478_v62, %s708_s30 }
 0x310   : > { %486 = vperm.xlu1 %669, %v477_v61  }
 0x37e   : > { %v481_v63 = vpop.permute.xlu1 %480 }
 0x37f   : > { %v483_v0 = vsub.f32 %v470_v59, %v481_v63 }
 0x381   : > { %493 = vperm.xlu0 %670, %v483_v0  }
 0x38b   : > { %v487_v1 = vpop.permute.xlu1 %486 }
 0x38c   : > { %v489_v4 = vmul.f32 %v487_v1, %v460_v2  ;;  %v490_v5 = vmul.f32 %v487_v1, %v461_v3 }
 0x3fc   : > { %v494_v6 = vpop.permute.xlu0 %493 }
 0x3fd   : > { %v496_v7 = vadd.f32 %v494_v6, %v489_v4  ;;  %v497_v8 = vadd.f32 %v494_v6, %v490_v5 }
 0x3ff   : > { %499 = vst.msk [vmem:[%s823_s3] sm:$0xff] %vm498_vm7, %v496_v7  ;;  %500 = vst.msk [vmem:[%s823_s3 + $0x8] sm:$0xff] %vm498_vm7, %v497_v8 }
 0x400 PF: > { %s13_s14 = sadd.s32 1, %s695_s14   ;;  %s824_s12 = smov %s691_s13 }
 0x401   : > { %p10_p7 = scmp.ge.s32.totalorder %s13_s14, 4   ;;  %s825_s13 = smov %s827_s15 }
 0x403   :  { %12 = sbr.rel (!%p10_p7) target bundleno = 2 (0x2), region = 77 }

// kernel: iblock_forward.7
= control target key start
LH: loop header
LB: loop body
LE: loop exit
PB: predicated region body
PF: predicated region fallthrough
CT: control target
= control target key end

     0   :  { %9 = vsyncpa [#allocation5], 0  ;;  %s976_s0 = inlined_call_operand.vmem [shape: f32[2,4,16], index: 0, kind: input, shape index: {}]   ;;  %s977_s1 = inlined_call_operand.vmem [shape: f32[8,36], index: 1, kind: input, shape index: {}]   ;;  %s978_s2 = inlined_call_operand.vmem [shape: f32[8,2], index: 2, kind: input, shape index: {}]   ;;  %s979_s3 = inlined_call_operand.vmem [shape: f32[2,8,8], index: 3, kind: input, shape index: {}]   ;;  %s980_s4 = inlined_call_operand.hbm [shape: f32[2,8,8], index: 4, kind: output, shape index: {}]  }
   0x1   :  { %11 = vsyncpa [#allocation5 + $0x1], 0  ;;  %s870_s15 = smov 0   ;;  %s872_s16 = smov 0  }
   0x2   :  { %s874_s17 = smov 0  }
   0x3 LB: > { %s660_s18 = sadd.s32 4294967295, %s825_s17   ;;  %s661_s19 = sadd.s32 4294967294, %s825_s17   ;;  %s825_s17 = sphi %s874_s17, %s17_s17   ;;  %s821_s16 = sphi %s872_s16, %s983_s16   ;;  %s817_s15 = sphi %s870_s15, %s982_s15  }
   0x4   : > { %s29_s20 = sadd.s32 1, %s821_s16  ;;  %p666_p0 = scmp.ge.s32.totalorder %s825_s17, 1 }
   0x5   : > { %p31_p1 = scmp.ge.s32.totalorder %s29_s20, 2  ;;  %p203_p2 = scmp.lt.s32.totalorder %s825_s17, 3 }
   0x7   : > { %s985_s20 = smov (%p31_p1, %s29_s20), 0  ;;  %p204_p3 = pnand %p666_p0, %p203_p2 }
   0x8   : > { %p257_p4 = scmp.eq.s32.totalorder (!%p204_p3), %s817_s15, 0 }
   0x9   : > { %207 = sbr.rel (%p204_p3) target bundleno = 1044 (0x414), region = 36 }
   0xe   : > { %262 = sbr.rel (!%p257_p4) target bundleno = 19 (0x13), region = 40  ;;  %vm263_vm0 = vcmask (%p257_p4), 15360   ;;  %v827_v0 = vmov (%p257_p4), 0.0  }
   0xf   : > { %264 = vst.msk [vmem:[#allocation3] sm:$0xff] (%p257_p4), %vm263_vm0, %v827_v0 }
  0x13 PF: > { %p668_p5 = scmp.ne.s32.totalorder %s817_s15, 0 }
  0x14   : > { %s828_s23 = smov (!%p668_p5), 122   ;;  %s829_s24 = smov (!%p668_p5), 120  }
  0x15   : > { %267 = sbr.rel (%p668_p5) target bundleno = 518 (0x206), region = 44  ;;  %s831_s27 = smov (!%p668_p5), 121  }
  0x16   : > { %s832_s28 = smov (!%p668_p5), 124   ;;  %s833_s29 = smov (!%p668_p5), 123  }
  0x17   : > { %s835_s30 = smov (!%p668_p5), 126   ;;  %s836_s5 = smov (!%p668_p5), 125  }
  0x18   : > { %s837_s6 = smov (!%p668_p5), 127  }
  0x1a   : > { %v897_v1 = vld [vmem:[%s976_s0] sm:$0xf]  ;;  %v905_v3 = vld [vmem:[%s976_s0 + $0x4] sm:$0xf]  ;;  %v830_v4 = vmov 0.0   ;;  %vm834_vm1 = vmmov 0  }
  0x1b   : > { %287 = vrot.lane.b32.xlu1 %v897_v1, %s828_s23  ;;  %293 = vrot.lane.b32.xlu0 %v897_v1, %s829_s24  ;;  %v271_v2 = vrot.slane %v897_v1, 4  ;;  %v379_v5 = vrot.slane %v905_v3, 4  ;;  %vm295_vm2 = vcmask 1043456   ;;  %v268_v28 = vld [vmem:[%s977_s1] sm:$0xff]  ;;  %vm300_vm3 = vcmask 293888   ;;  %v496_v46 = vld [vmem:[#allocation3] sm:$0xff] }
  0x1c   : > { %692 = vmatprep.subr.mxu0 %v830_v4  ;;  %705 = vmatprep.subr.mxu1 %v830_v4  ;;  %vm479_vm4 = vcmask 64512   ;;  %vm497_vm5 = vcmask 7168   ;;  %vm500_vm6 = vcmask 15360  }
  0x1d   : > { %702 = vmatprep.mubr.msk.f32.mxu0 %vm834_vm1, %v830_v4  ;;  %715 = vmatprep.mubr.msk.f32.mxu1 %vm834_vm1, %v830_v4 }
  0x1f   : > { %401 = vrot.lane.b32.xlu0 %v905_v3, %s829_s24  ;;  %290 = vrot.lane.b32.xlu1 %v271_v2, %s831_s27 }
  0x23   : > { %395 = vrot.lane.b32.xlu0 %v905_v3, %s828_s23  ;;  %398 = vrot.lane.b32.xlu1 %v379_v5, %s831_s27 }
  0x27   : > { %281 = vrot.lane.b32.xlu0 %v897_v1, %s832_s28  ;;  %284 = vrot.lane.b32.xlu1 %v271_v2, %s833_s29 }
  0x2b   : > { %389 = vrot.lane.b32.xlu0 %v905_v3, %s832_s28  ;;  %392 = vrot.lane.b32.xlu1 %v379_v5, %s833_s29 }
  0x2f   : > { %275 = vrot.lane.b32.xlu0 %v897_v1, %s835_s30  ;;  %278 = vrot.lane.b32.xlu1 %v271_v2, %s836_s5 }
  0x33   : > { %383 = vrot.lane.b32.xlu0 %v905_v3, %s835_s30  ;;  %386 = vrot.lane.b32.xlu1 %v379_v5, %s836_s5 }
  0x37   : > { %272 = vrot.lane.b32.xlu0 %v271_v2, %s837_s6  ;;  %380 = vrot.lane.b32.xlu1 %v379_v5, %s837_s6 }
  0x8d   : > { %v288_v6 = vpop.permute.xlu1 %287  ;;  %v294_v7 = vpop.permute.xlu0 %293 }
  0x8e   : > { %693 = vmatpush3.msk.msra.mxu0 %vm295_vm2, %v294_v7 }
  0x8f   : > { %694 = vmatprep.subr.mxu0 %v830_v4 }
  0x91   : > { %v402_v8 = vpop.permute.xlu0 %401  ;;  %v291_v9 = vpop.permute.xlu1 %290 }
  0x92   : > { %706 = vmatpush3.msk.msra.mxu1 %vm295_vm2, %v402_v8  ;;  %v299_v10 = vsel %vm295_vm2, %v288_v6, %v291_v9 }
  0x93   : > { %695 = vmatpush3.msra.mxu0 %v299_v10  ;;  %707 = vmatprep.subr.mxu1 %v830_v4 }
  0x94   : > { %696 = vmatprep.subr.mxu0 %v830_v4 }
  0x95   : > { %v396_v11 = vpop.permute.xlu0 %395  ;;  %v399_v12 = vpop.permute.xlu1 %398 }
  0x96   : > { %v406_v13 = vsel %vm295_vm2, %v396_v11, %v399_v12 }
  0x97   : > { %708 = vmatpush3.msra.mxu1 %v406_v13 }
  0x98   : > { %709 = vmatprep.subr.mxu1 %v830_v4 }
  0x99   : > { %v282_v14 = vpop.permute.xlu0 %281  ;;  %v285_v15 = vpop.permute.xlu1 %284 }
  0x9a   : > { %v298_v16 = vsel %vm295_vm2, %v282_v14, %v285_v15 }
  0x9b   : > { %697 = vmatpush3.msra.mxu0 %v298_v16 }
  0x9c   : > { %698 = vmatprep.subr.mxu0 %v830_v4 }
  0x9d   : > { %v390_v17 = vpop.permute.xlu0 %389  ;;  %v393_v18 = vpop.permute.xlu1 %392 }
  0x9e   : > { %v405_v19 = vsel %vm295_vm2, %v390_v17, %v393_v18 }
  0x9f   : > { %710 = vmatpush3.msra.mxu1 %v405_v19 }
  0xa0   : > { %711 = vmatprep.subr.mxu1 %v830_v4 }
  0xa1   : > { %v276_v20 = vpop.permute.xlu0 %275  ;;  %v279_v21 = vpop.permute.xlu1 %278 }
  0xa2   : > { %v297_v22 = vsel %vm295_vm2, %v276_v20, %v279_v21 }
  0xa3   : > { %699 = vmatpush3.msra.mxu0 %v297_v22 }
  0xa4   : > { %700 = vmatprep.subr.mxu0 %v830_v4 }
  0xa5   : > { %v384_v23 = vpop.permute.xlu0 %383  ;;  %v387_v24 = vpop.permute.xlu1 %386 }
  0xa6   : > { %v404_v25 = vsel %vm295_vm2, %v384_v23, %v387_v24 }
  0xa7   : > { %712 = vmatpush3.msra.mxu1 %v404_v25 }
  0xa8   : > { %713 = vmatprep.subr.mxu1 %v830_v4 }
  0xa9   : > { %v273_v26 = vpop.permute.xlu0 %272  ;;  %v381_v27 = vpop.permute.xlu1 %380 }
  0xaa   : > { %v296_v29 = vsel %vm295_vm2, %v897_v1, %v273_v26  ;;  %v403_v30 = vsel %vm295_vm2, %v905_v3, %v381_v27 }
  0xab   : > { %701 = vmatpush3.msra.mxu0 %v296_v29  ;;  %714 = vmatpush3.msra.mxu1 %v403_v30 }
  0xac   : > { %703 = vmatmul.mubr.msk.f32.vlgmr.msra.gmra.mxu0 %vm300_vm3, %v268_v28  ;;  %716 = vmatmul.mubr.msk.f32.vlgmr.msra.gmra.mxu1 %vm300_vm3, %v268_v28 }
 0x16c   : > { %v372_v31 = vpop.f32.mrf.mxu0  ;;  %v475_v32 = vpop.f32.mrf.mxu1 }
 0x16d   : > { %504 = vst.msk [vmem:[#allocation2] sm:$0xff] %vm479_vm4, %v372_v31  ;;  %505 = vst.msk [vmem:[#allocation2 + $0x8] sm:$0xff] %vm479_vm4, %v475_v32  ;;  %v483_v33 = vsel %vm479_vm4, %v475_v32, 0.0  ;;  %v480_v34 = vsel %vm479_vm4, %v372_v31, 0.0  ;;  %v487_v35 = vmul.f32 %v372_v31, %v372_v31  ;;  %v488_v38 = vmul.f32 %v475_v32, %v475_v32 }
 0x16e   : > { %484 = vadd.xlane.f32.xlu1 %v483_v33  ;;  %481 = vadd.xlane.f32.xlu0 %v480_v34  ;;  %v704_v36 = vpop.f32.mrf.mxu0  ;;  %v717_v37 = vpop.f32.mrf.mxu1 }
 0x16f   : > { %v489_v39 = vsel %vm479_vm4, %v487_v35, 0.0  ;;  %v492_v40 = vsel %vm479_vm4, %v488_v38, 0.0 }
 0x172   : > { %490 = vadd.xlane.f32.xlu0 %v489_v39 }
 0x176   : > { %493 = vadd.xlane.f32.xlu0 %v492_v40 }
 0x1f7   : > { %v482_v41 = vpop.xlane.xlu0 %481  ;;  %v485_v43 = vpop.xlane.xlu1 %484 }
 0x1f8   : > { %v486_v45 = vadd.f32 %v485_v43, %v482_v41 }
 0x1fb   : > { %v491_v42 = vpop.xlane.xlu0 %490 }
 0x1ff   : > { %v494_v44 = vpop.xlane.xlu0 %493 }
 0x200   : > { %v495_v47 = vadd.f32 %v494_v44, %v491_v42 }
 0x202   : > { %v498_v48 = vsel %vm497_vm5, %v486_v45, %v495_v47 }
 0x203   : > { %v499_v49 = vadd.f32 %v498_v48, %v496_v46 }
 0x205   : > { %501 = vst.msk [vmem:[#allocation3] sm:$0xff] %vm500_vm6, %v499_v49 }
 0x206 PF: > { %p674_p6 = scmp.ne.s32.totalorder %s817_s15, 1 }
 0x207   : > { %s838_s9 = smov (!%p674_p6), 1   ;;  %s840_s10 = smov (!%p674_p6), 127  }
 0x208   : > { %509 = sbr.rel (%p674_p6) target bundleno = 1030 (0x406), region = 48 }
 0x20d   : > { %v514_v50 = vld [vmem:[#allocation3] sm:$0xff]  ;;  %v839_v56 = vmov 0   ;;  %v841_v58 = vmov 1   ;;  %v522_v59 = vld [vmem:[%s978_s2] sm:$0xff]  ;;  %v513_v3 = vld [vmem:[#allocation2 + $0x8] sm:$0xff]  ;;  %vm556_vm7 = vcmask 64512  }
 0x20e   : > { %v515_v51 = vmul.f32 0.0625, %v514_v50  ;;  %771 = vset.pattern.permute.xlu1 %v839_v56  ;;  %772 = vset.pattern.permute.xlu0 %v841_v58  ;;  %v512_v2 = vld [vmem:[#allocation2] sm:$0xff]  ;;  %v551_v7 = vld [vmem:[%s979_s3 + $0x8] sm:$0xff] }
 0x20f   : > { %v550_v6 = vld [vmem:[%s979_s3] sm:$0xff] }
 0x210   : > { %v516_v52 = vmul.f32 %v515_v51, %v515_v51 }
 0x212   : > { %518 = vrot.lane.b32.xlu0 %v516_v52, %s838_s9 }
 0x284   : > { %v519_v53 = vpop.permute.xlu0 %518 }
 0x285   : > { %v521_v54 = vsub.f32 %v515_v51, %v519_v53 }
 0x287   : > { %v523_v55 = vadd.f32 0.001, %v521_v54 }
 0x289   : > { %773 = vrsqrt.f32 %v523_v55 }
 0x296   : > { %v774_v57 = vpop.eup %773 }
 0x297   : > { %526 = vrot.lane.b32.xlu0 %v774_v57, %s840_s10 }
 0x309   : > { %v527_v60 = vpop.permute.xlu0 %526 }
 0x30a   : > { %v529_v61 = vmul.f32 %v527_v60, %v522_v59 }
 0x30c   : > { %v530_v62 = vmul.f32 %v529_v61, %v515_v51 }
 0x30e   : > { %532 = vrot.lane.b32.xlu1 %v530_v62, %s838_s9 }
 0x312   : > { %538 = vperm.xlu1 %771, %v529_v61  }
 0x380   : > { %v533_v63 = vpop.permute.xlu1 %532 }
 0x381   : > { %v535_v0 = vsub.f32 %v522_v59, %v533_v63 }
 0x383   : > { %545 = vperm.xlu0 %772, %v535_v0  }
 0x38d   : > { %v539_v1 = vpop.permute.xlu1 %538 }
 0x38e   : > { %v541_v4 = vmul.f32 %v539_v1, %v512_v2  ;;  %v542_v5 = vmul.f32 %v539_v1, %v513_v3 }
 0x3fe   : > { %v546_v8 = vpop.permute.xlu0 %545 }
 0x3ff   : > { %v548_v9 = vadd.f32 %v546_v8, %v541_v4  ;;  %v549_v10 = vadd.f32 %v546_v8, %v542_v5 }
 0x401   : > { %v552_v11 = vadd.f32 %v550_v6, %v548_v9  ;;  %v553_v12 = vadd.f32 %v551_v7, %v549_v10 }
 0x403   : > { %v554_v13 = vmax.f32 %v552_v11, 0.0  ;;  %v555_v14 = vmax.f32 %v553_v12, 0.0 }
 0x405   : > { %557 = vst.msk [vmem:[#allocation4] sm:$0xff] %vm556_vm7, %v554_v13  ;;  %558 = vst.msk [vmem:[#allocation4 + $0x8] sm:$0xff] %vm556_vm7, %v555_v14 }
 0x406 PF: > { %p953_p7 = scmp.eq.s32.totalorder %s660_s18, 1  ;;  %s842_s23 = smov [#allocation4]  }
 0x407   : > { %s574_s24 = sshll.u32 %s842_s23, 4  ;;  %s575_s24 = int_to_ptr.vmem [resolvable:$true] %s574_s24 }
 0x408   : > { %s775_s25 = scalar_lea.vmem %s575_s24, 256  ;;  %s781_s26 = scalar_lea.vmem %s575_s24, 512 }
 0x409   : > { %p776_p8 = scmp.ne.s32.totalorder %s575_s24, %s775_s25  ;;  %p782_p11 = scmp.lt.s32.totalorder %s575_s24, %s575_s24 }
 0x40a   : > { %p783_p12 = scmp.lt.s32.totalorder %s781_s26, %s775_s25 }
 0x40b   : > { %p777_p9 = pnand %p776_p8, %p953_p7 }
 0x40c   : > { %p784_p13 = por %p783_p12, %p782_p11 }
 0x40d   : > { %p778_p10 = pneg %p777_p9 }
 0x40f   : > { %p785_p0 = pnand %p784_p13, %p778_p10 }
 0x411   : > { %788 = shalt.err (!%p785_p0)
}
 0x412   : > { %s843_s27 = smov 128   ;;  %s844_s18 = smov 8  }
 0x413   : > { %719 = dma.vmem_to_hbm [thread:$0]  (%p953_p7), %s575_s24, 256, %s980_s4, [#allocation5], %s843_s27, %s843_s27, %s844_s18  }
 0x414 PF: > { %p727_p1 = scmp.ge.s32.totalorder %s825_s17, 2  ;;  %p728_p2 = scmp.eq.s32.totalorder %s661_s19, 1 }
 0x416   : > { %p723_p3 = pnand %p728_p2, %p727_p1 }
 0x418   : > { %p724_p4 = pneg %p723_p3 }
 0x41a   : > { %812 = dma.done.wait (%p724_p4), [#allocation5], 256  }
 0x41b   : > { %814 = vsyncadd (%p724_p4), [#allocation5], 4294967040  ;;  %s17_s17 = sadd.s32 1, %s825_s17   ;;  %s982_s15 = smov %s821_s16 }
 0x41c   : > { %p14_p5 = scmp.ge.s32.totalorder %s17_s17, 4   ;;  %s983_s16 = smov %s985_s20 }
 0x41e   :  { %16 = sbr.rel (!%p14_p5) target bundleno = 3 (0x3), region = 89 }
 0x423   :  { %595 = vsyncpa [#allocation5], 1 }
 0x424   :  { %597 = vsyncpa [#allocation5 + $0x1], 1 }

</bundles_post_ra>
